<compile_context>
chip_gen: v5e
topology: v5e:2x2
jax: 0.10.0
libtpu: 0.0.40
codegen_flags: <defaults>
</compile_context>

<pallas_src>
import functools

import jax
import jax.numpy as jnp
from jax import lax
from jax.experimental import pallas as pl
from jax.experimental.pallas import tpu as pltpu

EPS = 1e-5


# ---------------------------------------------------------------------------
# Kernel helpers
# ---------------------------------------------------------------------------
def _leaky(y, alpha):
    return jnp.where(y >= 0, y, alpha * y)


def _zero_border(xp_ref):
    """Zero only the 1-pixel halo border of a padded VMEM scratch.

    The interior [1:h+1, 1:w+1, :] is fully rewritten every grid step, so only
    the 4 border strips need zeroing.  Done every step (cheap) rather than once
    under `pl.program_id(0) == 0` so the kernel stays correct when the
    'parallel' batch axis is sharded across TensorCores (per-core scratch).
    """
    hp, wp, c = xp_ref.shape
    zr = jnp.zeros((1, wp, c), xp_ref.dtype)
    zc = jnp.zeros((hp, 1, c), xp_ref.dtype)
    xp_ref[0:1, :, :] = zr
    xp_ref[hp - 1:hp, :, :] = zr
    xp_ref[:, 0:1, :] = zc
    xp_ref[:, wp - 1:wp, :] = zc


def _im2col(xp_ref, slab_ref, ho, wo, cin, stride):
    """Scatter the 9 taps of a 3x3 conv window from the padded activation into
    an (ho*wo, 9*cin) im2col slab -- one store per tap, then the caller issues
    a single big-K matmul."""
    for kh in range(3):
        for kw in range(3):
            if stride == 1:
                patch = xp_ref[pl.ds(kh, ho), pl.ds(kw, wo), :]
            else:
                # TODO(synk): the stride-2 W read is sublane-strided (XLU
                # gather per tap); phase-split / space-to-depth act1 would make
                # it a dense vld in the downsampling blocks.
                patch = xp_ref[pl.ds(kh, ho, stride), pl.ds(kw, wo, stride), :]
            t = kh * 3 + kw
            slab_ref[:, t * cin:(t + 1) * cin] = (
                patch.reshape(ho * wo, cin).astype(slab_ref.dtype))


# ---------------------------------------------------------------------------
# Fused kernel
# ---------------------------------------------------------------------------
def _basic_block_kernel(x_ref, w1_ref, w2_ref, s1_ref, b1_ref, s2_ref, b2_ref,
                        *rest, stride, alpha, equal_in_out, act_before_res,
                        mxu_dtype):
    if equal_in_out:
        o_ref, xp1_ref, xp2_ref, sl1_ref, sl2_ref = rest
        ws_ref = None
    else:
        ws_ref, o_ref, xp1_ref, xp2_ref, sl1_ref, sl2_ref = rest

    h, w, cin = x_ref.shape
    hp2, wp2, cout = xp2_ref.shape
    ho, wo = hp2 - 2, wp2 - 2
    f32 = jnp.float32

    # ---- zero only the halo borders of the padded scratches ----------------
    _zero_border(xp1_ref)
    _zero_border(xp2_ref)

    # ---- BN1 + LeakyReLU (f32 VPU math; scale/shift folded on host) --------
    act1 = _leaky(x_ref[...].astype(f32) * s1_ref[...] + b1_ref[...], alpha)
    xp1_ref[1:h + 1, 1:w + 1, :] = act1

    # ---- conv1: 3x3, stride -- im2col slab + ONE MXU matmul ----------------
    _im2col(xp1_ref, sl1_ref, ho, wo, cin, stride)
    acc1 = jnp.dot(sl1_ref[...], w1_ref[...],
                   preferred_element_type=f32)          # (ho*wo, cout) f32

    # ---- BN2 + LeakyReLU on the f32 accumulator -----------------------------
    act2 = _leaky(acc1.reshape(ho, wo, cout) * s2_ref[...] + b2_ref[...], alpha)
    xp2_ref[1:ho + 1, 1:wo + 1, :] = act2

    # ---- conv2: 3x3, stride 1 -- im2col + ONE matmul -------------------------
    _im2col(xp2_ref, sl2_ref, ho, wo, cout, 1)
    # TODO(synk): at production ho*wo, tile the matmul M dim in row chunks /
    # accumulate into an explicit f32 VMEM scratch to bound vreg pressure.
    acc2 = jnp.dot(sl2_ref[...], w2_ref[...], preferred_element_type=f32)

    # ---- shortcut + residual add (stays in VMEM) ------------------------------
    if equal_in_out:
        # Identity: re-read x just before the add (keeps its live range short
        # across the two conv phases).
        res = x_ref[...].astype(f32).reshape(ho * wo, cout)
    else:
        if act_before_res:
            if stride == 1:
                sc = xp1_ref[1:h + 1, 1:w + 1, :]
            else:
                sc = xp1_ref[pl.ds(1, ho, stride), pl.ds(1, wo, stride), :]
        else:
            if stride == 1:
                sc = x_ref[...]
            else:
                sc = x_ref[pl.ds(0, ho, stride), pl.ds(0, wo, stride), :]
        res = jnp.dot(sc.reshape(ho * wo, cin).astype(mxu_dtype), ws_ref[...],
                      preferred_element_type=f32)

    # TODO(synk): with cout < 128 this store is a masked vst; a lane-dense
    # (ho, wo*cout) out layout would fix that at demo widths -- it resolves
    # itself at real WideResNet widths (>= 128 channels).
    o_ref[...] = (acc2 + res).reshape(ho, wo, cout).astype(o_ref.dtype)


# ---------------------------------------------------------------------------
# Wrapper
# ---------------------------------------------------------------------------
def basic_block_forward(x_nhwc, w1, w2, ws, scale1, shift1, scale2, shift2, *,
                        stride, alpha, equal_in_out, act_before_res,
                        mxu_dtype=jnp.bfloat16):
    n, h, w, cin = x_nhwc.shape
    cout = w1.shape[-1]
    ho = (h + 2 - 3) // stride + 1
    wo = (w + 2 - 3) // stride + 1
    if equal_in_out:
        assert stride == 1 and cin == cout  # required for the identity residual

    f32 = jnp.float32
    # Host-side: matmul-ready weight layout + MXU dtype cast, done once;
    # constant index_maps keep the weights resident in VMEM.
    w1r = w1.reshape(9 * cin, cout).astype(mxu_dtype)
    w2r = w2.reshape(9 * cout, cout).astype(mxu_dtype)

    kernel = functools.partial(
        _basic_block_kernel, stride=stride, alpha=alpha,
        equal_in_out=equal_in_out, act_before_res=act_before_res,
        mxu_dtype=mxu_dtype)

    in_specs = [
        pl.BlockSpec((None, h, w, cin), lambda i: (i, 0, 0, 0)),
        pl.BlockSpec((9 * cin, cout), lambda i: (0, 0)),
        pl.BlockSpec((9 * cout, cout), lambda i: (0, 0)),
        pl.BlockSpec((1, 1, cin), lambda i: (0, 0, 0)),
        pl.BlockSpec((1, 1, cin), lambda i: (0, 0, 0)),
        pl.BlockSpec((1, 1, cout), lambda i: (0, 0, 0)),
        pl.BlockSpec((1, 1, cout), lambda i: (0, 0, 0)),
    ]
    args = [x_nhwc, w1r, w2r,
            scale1.reshape(1, 1, cin).astype(f32),
            shift1.reshape(1, 1, cin).astype(f32),
            scale2.reshape(1, 1, cout).astype(f32),
            shift2.reshape(1, 1, cout).astype(f32)]
    if not equal_in_out:
        in_specs.append(pl.BlockSpec((cin, cout), lambda i: (0, 0)))
        args.append(ws.astype(mxu_dtype))

    # TODO(synk): for production WRN feature maps, add an output-row grid axis
    # with a 2-row input halo (mandatory on v7x's 64 MiB VMEM) and size the row
    # tile so padded acts + im2col slabs + double-buffered I/O blocks fit, with
    # >=4-8 steps per TensorCore; demo images fit whole-image-per-step.
    return pl.pallas_call(
        kernel,
        out_shape=jax.ShapeDtypeStruct((n, ho, wo, cout), x_nhwc.dtype),
        grid=(n,),
        in_specs=in_specs,
        out_specs=pl.BlockSpec((None, ho, wo, cout), lambda i: (i, 0, 0, 0)),
        scratch_shapes=[
            pltpu.VMEM((h + 2, w + 2, cin), jnp.float32),     # padded act1
            pltpu.VMEM((ho + 2, wo + 2, cout), jnp.float32),  # padded act2
            pltpu.VMEM((ho * wo, 9 * cin), mxu_dtype),        # im2col slab 1
            pltpu.VMEM((ho * wo, 9 * cout), mxu_dtype),       # im2col slab 2
        ],
        compiler_params=pltpu.CompilerParams(
            dimension_semantics=("parallel",),
            vmem_limit_bytes=64 * 1024 * 1024),
    )(*args)


# ---------------------------------------------------------------------------
# BasicBlock module (deterministic synthetic parameters)
# ---------------------------------------------------------------------------
class BasicBlockPallas:
    def __init__(self, key, in_planes, out_planes, stride, dropRate=0.0,
                 leakyRate=0.01, actBeforeRes=True, mxu_dtype=jnp.bfloat16):
        self.in_planes = in_planes
        self.out_planes = out_planes
        self.stride = stride
        self.droprate = dropRate
        self.leakyRate = leakyRate
        self.equalInOut = in_planes == out_planes
        self.actBeforeRes = actBeforeRes
        self.mxu_dtype = mxu_dtype

        ks = jax.random.split(key, 11)
        f32 = jnp.float32
        # BatchNorm1 params (eval mode: running stats)
        self.bn1_gamma = jax.random.uniform(ks[0], (in_planes,), f32, 0.5, 1.5)
        self.bn1_beta = 0.1 * jax.random.normal(ks[1], (in_planes,), f32)
        self.bn1_mean = 0.1 * jax.random.normal(ks[2], (in_planes,), f32)
        self.bn1_var = jax.random.uniform(ks[3], (in_planes,), f32, 0.5, 1.5)
        # BatchNorm2 params
        self.bn2_gamma = jax.random.uniform(ks[4], (out_planes,), f32, 0.5, 1.5)
        self.bn2_beta = 0.1 * jax.random.normal(ks[5], (out_planes,), f32)
        self.bn2_mean = 0.1 * jax.random.normal(ks[6], (out_planes,), f32)
        self.bn2_var = jax.random.uniform(ks[7], (out_planes,), f32, 0.5, 1.5)
        # Conv weights, HWIO layout (torch shapes would be OIHW)
        s1 = 1.0 / (in_planes * 9) ** 0.5
        s2 = 1.0 / (out_planes * 9) ** 0.5
        self.w_conv1 = s1 * jax.random.normal(ks[8], (3, 3, in_planes, out_planes), f32)
        self.w_conv2 = s2 * jax.random.normal(ks[9], (3, 3, out_planes, out_planes), f32)
        if not self.equalInOut:
            ss = 1.0 / in_planes ** 0.5
            self.w_short = ss * jax.random.normal(ks[10], (in_planes, out_planes), f32)
        else:
            self.w_short = None

    def __call__(self, x_nchw):
        # TODO(synk): dropout (dropRate>0) omitted — torch training-mode RNG is
        # not reproducible here; demo uses dropRate=0.
        x = jnp.transpose(x_nchw, (0, 2, 3, 1))  # NCHW -> NHWC

        scale1 = self.bn1_gamma / jnp.sqrt(self.bn1_var + EPS)
        shift1 = self.bn1_beta - self.bn1_mean * scale1
        scale2 = self.bn2_gamma / jnp.sqrt(self.bn2_var + EPS)
        shift2 = self.bn2_beta - self.bn2_mean * scale2

        out = basic_block_forward(
            x, self.w_conv1, self.w_conv2, self.w_short,
            scale1, shift1, scale2, shift2,
            stride=self.stride, alpha=self.leakyRate,
            equal_in_out=self.equalInOut, act_before_res=self.actBeforeRes,
            mxu_dtype=self.mxu_dtype)
        return jnp.transpose(out, (0, 3, 1, 2))  # NHWC -> NCHW


# ---------------------------------------------------------------------------
# Pure-JAX reference for validation
# ---------------------------------------------------------------------------
def ref_forward(blk, x_nchw):
    x = jnp.transpose(x_nchw, (0, 2, 3, 1))

    def bn_act(z, g, b, m, v):
        y = (z - m) / jnp.sqrt(v + EPS) * g + b
        return jnp.where(y >= 0, y, blk.leakyRate * y)

    def conv(z, w, stride, pad):
        return lax.conv_general_dilated(
            z, w, (stride, stride), [(pad, pad), (pad, pad)],
            dimension_numbers=("NHWC", "HWIO", "NHWC"),
            precision=lax.Precision.HIGHEST)

    if (not blk.equalInOut) and blk.actBeforeRes:
        x = bn_act(x, blk.bn1_gamma, blk.bn1_beta, blk.bn1_mean, blk.bn1_var)
        act1 = x
    else:
        act1 = bn_act(x, blk.bn1_gamma, blk.bn1_beta, blk.bn1_mean, blk.bn1_var)
    out = conv(act1, blk.w_conv1, blk.stride, 1)
    act2 = bn_act(out, blk.bn2_gamma, blk.bn2_beta, blk.bn2_mean, blk.bn2_var)
    if blk.equalInOut:
        res = x
    else:
        res = conv(x, blk.w_short.reshape(1, 1, blk.in_planes, blk.out_planes),
                   blk.stride, 0)
    out = conv(act2, blk.w_conv2, 1, 1) + res
    return jnp.transpose(out, (0, 3, 1, 2))


if __name__ == "__main__":
    key = jax.random.PRNGKey(0)
    k1, k2, kx1, kx2 = jax.random.split(key, 4)

    # Config 1: non-equal in/out (fused 1x1 conv shortcut), stride 2, bf16 MXU.
    # Reference is f32 Precision.HIGHEST, so tolerance is bf16-level.
    blk1 = BasicBlockPallas(k1, in_planes=4, out_planes=8, stride=2,
                            dropRate=0.0, leakyRate=0.01, actBeforeRes=True,
                            mxu_dtype=jnp.bfloat16)
    x1 = jax.random.normal(kx1, (2, 4, 16, 16), jnp.float32)  # NCHW
    y1 = jax.block_until_ready(blk1(x1))
    y1_ref = ref_forward(blk1, x1)
    assert y1.shape == (2, 8, 8, 8), y1.shape
    assert jnp.allclose(y1, y1_ref, atol=5e-2, rtol=5e-2), (
        float(jnp.max(jnp.abs(y1 - y1_ref))))

    # Config 2: equal in/out (identity residual), stride 1, f32 MXU path for a
    # tight-tolerance validation.
    blk2 = BasicBlockPallas(k2, in_planes=8, out_planes=8, stride=1,
                            dropRate=0.0, leakyRate=0.01, actBeforeRes=True,
                            mxu_dtype=jnp.float32)
    x2 = jax.random.normal(kx2, (2, 8, 16, 16), jnp.float32)  # NCHW
    y2 = jax.block_until_ready(blk2(x2))
    y2_ref = ref_forward(blk2, x2)
    assert y2.shape == (2, 8, 16, 16), y2.shape
    assert jnp.allclose(y2, y2_ref, atol=1e-3, rtol=1e-3), (
        float(jnp.max(jnp.abs(y2 - y2_ref))))

    print("KERNEL_OK")
</pallas_src>

<mosaic_0001>
module attributes {stable_mosaic.version = 11 : i64} {
  func.func @_basic_block_kernel(%arg0: i32, %arg1: memref<1x16x16x4xf32, #tpu.memory_space<vmem>>, %arg2: memref<36x8xbf16, #tpu.memory_space<vmem>>, %arg3: memref<72x8xbf16, #tpu.memory_space<vmem>>, %arg4: memref<1x1x4xf32, #tpu.memory_space<vmem>>, %arg5: memref<1x1x4xf32, #tpu.memory_space<vmem>>, %arg6: memref<1x1x8xf32, #tpu.memory_space<vmem>>, %arg7: memref<1x1x8xf32, #tpu.memory_space<vmem>>, %arg8: memref<4x8xbf16, #tpu.memory_space<vmem>>, %arg9: memref<1x8x8x8xf32, #tpu.memory_space<vmem>>, %arg10: memref<18x18x4xf32, #tpu.memory_space<vmem>>, %arg11: memref<10x10x8xf32, #tpu.memory_space<vmem>>, %arg12: memref<64x36xbf16, #tpu.memory_space<vmem>>, %arg13: memref<64x72xbf16, #tpu.memory_space<vmem>>) attributes {dimension_semantics = [#tpu.dimension_semantics<parallel>], iteration_bounds = array<i64: 2>, scalar_prefetch = 0 : i64, scratch_operands = 4 : i64, tpu.core_type = #tpu.core_type<tc>, window_params = [{transform_indices = @transform_0, window_bounds = array<i64: 1, 16, 16, 4>}, {pipeline_mode = #tpu.pipeline_mode<synchronous>, transform_indices = @transform_1, window_bounds = array<i64: 36, 8>}, {pipeline_mode = #tpu.pipeline_mode<synchronous>, transform_indices = @transform_2, window_bounds = array<i64: 72, 8>}, {pipeline_mode = #tpu.pipeline_mode<synchronous>, transform_indices = @transform_3, window_bounds = array<i64: 1, 1, 4>}, {pipeline_mode = #tpu.pipeline_mode<synchronous>, transform_indices = @transform_4, window_bounds = array<i64: 1, 1, 4>}, {pipeline_mode = #tpu.pipeline_mode<synchronous>, transform_indices = @transform_5, window_bounds = array<i64: 1, 1, 8>}, {pipeline_mode = #tpu.pipeline_mode<synchronous>, transform_indices = @transform_6, window_bounds = array<i64: 1, 1, 8>}, {pipeline_mode = #tpu.pipeline_mode<synchronous>, transform_indices = @transform_7, window_bounds = array<i64: 4, 8>}, {transform_indices = @transform_8, window_bounds = array<i64: 1, 8, 8, 8>}]} {
    %cst = arith.constant 0.000000e+00 : f32
    %0 = vector.broadcast %cst : f32 to vector<1x18x4xf32>
    %cst_0 = arith.constant 0.000000e+00 : f32
    %1 = vector.broadcast %cst_0 : f32 to vector<18x1x4xf32>
    %c0 = arith.constant 0 : index
    %c0_1 = arith.constant 0 : index
    %c0_2 = arith.constant 0 : index
    %2 = vector.load %arg10[%c0, %c0_1, %c0_2] : memref<18x18x4xf32, #tpu.memory_space<vmem>>, vector<1x18x4xf32>
    tpu.vector_store %arg10[%c0, %c0_1, %c0_2], %0 {strides = array<i32>} : memref<18x18x4xf32, #tpu.memory_space<vmem>>, vector<1x18x4xf32>,
    %c17 = arith.constant 17 : index
    %c0_3 = arith.constant 0 : index
    %c0_4 = arith.constant 0 : index
    %3 = vector.load %arg10[%c17, %c0_3, %c0_4] : memref<18x18x4xf32, #tpu.memory_space<vmem>>, vector<1x18x4xf32>
    tpu.vector_store %arg10[%c17, %c0_3, %c0_4], %0 {strides = array<i32>} : memref<18x18x4xf32, #tpu.memory_space<vmem>>, vector<1x18x4xf32>,
    %c0_5 = arith.constant 0 : index
    %c0_6 = arith.constant 0 : index
    %c0_7 = arith.constant 0 : index
    %4 = vector.load %arg10[%c0_5, %c0_6, %c0_7] : memref<18x18x4xf32, #tpu.memory_space<vmem>>, vector<18x1x4xf32>
    tpu.vector_store %arg10[%c0_5, %c0_6, %c0_7], %1 {strides = array<i32>} : memref<18x18x4xf32, #tpu.memory_space<vmem>>, vector<18x1x4xf32>,
    %c0_8 = arith.constant 0 : index
    %c17_9 = arith.constant 17 : index
    %c0_10 = arith.constant 0 : index
    %5 = vector.load %arg10[%c0_8, %c17_9, %c0_10] : memref<18x18x4xf32, #tpu.memory_space<vmem>>, vector<18x1x4xf32>
    tpu.vector_store %arg10[%c0_8, %c17_9, %c0_10], %1 {strides = array<i32>} : memref<18x18x4xf32, #tpu.memory_space<vmem>>, vector<18x1x4xf32>,
    %cst_11 = arith.constant 0.000000e+00 : f32
    %6 = vector.broadcast %cst_11 : f32 to vector<1x10x8xf32>
    %cst_12 = arith.constant 0.000000e+00 : f32
    %7 = vector.broadcast %cst_12 : f32 to vector<10x1x8xf32>
    %c0_13 = arith.constant 0 : index
    %c0_14 = arith.constant 0 : index
    %c0_15 = arith.constant 0 : index
    %8 = vector.load %arg11[%c0_13, %c0_14, %c0_15] : memref<10x10x8xf32, #tpu.memory_space<vmem>>, vector<1x10x8xf32>
    tpu.vector_store %arg11[%c0_13, %c0_14, %c0_15], %6 {strides = array<i32>} : memref<10x10x8xf32, #tpu.memory_space<vmem>>, vector<1x10x8xf32>,
    %c9 = arith.constant 9 : index
    %c0_16 = arith.constant 0 : index
    %c0_17 = arith.constant 0 : index
    %9 = vector.load %arg11[%c9, %c0_16, %c0_17] : memref<10x10x8xf32, #tpu.memory_space<vmem>>, vector<1x10x8xf32>
    tpu.vector_store %arg11[%c9, %c0_16, %c0_17], %6 {strides = array<i32>} : memref<10x10x8xf32, #tpu.memory_space<vmem>>, vector<1x10x8xf32>,
    %c0_18 = arith.constant 0 : index
    %c0_19 = arith.constant 0 : index
    %c0_20 = arith.constant 0 : index
    %10 = vector.load %arg11[%c0_18, %c0_19, %c0_20] : memref<10x10x8xf32, #tpu.memory_space<vmem>>, vector<10x1x8xf32>
    tpu.vector_store %arg11[%c0_18, %c0_19, %c0_20], %7 {strides = array<i32>} : memref<10x10x8xf32, #tpu.memory_space<vmem>>, vector<10x1x8xf32>,
    %c0_21 = arith.constant 0 : index
    %c9_22 = arith.constant 9 : index
    %c0_23 = arith.constant 0 : index
    %11 = vector.load %arg11[%c0_21, %c9_22, %c0_23] : memref<10x10x8xf32, #tpu.memory_space<vmem>>, vector<10x1x8xf32>
    tpu.vector_store %arg11[%c0_21, %c9_22, %c0_23], %7 {strides = array<i32>} : memref<10x10x8xf32, #tpu.memory_space<vmem>>, vector<10x1x8xf32>,
    %c0_24 = arith.constant 0 : index
    %c0_25 = arith.constant 0 : index
    %c0_26 = arith.constant 0 : index
    %c0_27 = arith.constant 0 : index
    %12 = vector.load %arg1[%c0_24, %c0_25, %c0_26, %c0_27] : memref<1x16x16x4xf32, #tpu.memory_space<vmem>>, vector<1x16x16x4xf32>
    %13 = vector.shape_cast %12 : vector<1x16x16x4xf32> to vector<16x16x4xf32>
    %c0_28 = arith.constant 0 : index
    %c0_29 = arith.constant 0 : index
    %c0_30 = arith.constant 0 : index
    %14 = vector.load %arg4[%c0_28, %c0_29, %c0_30] : memref<1x1x4xf32, #tpu.memory_space<vmem>>, vector<1x1x4xf32>
    %15 = vector.broadcast %14 : vector<1x1x4xf32> to vector<16x16x4xf32>
    %16 = arith.mulf %13, %15 : vector<16x16x4xf32>
    %c0_31 = arith.constant 0 : index
    %c0_32 = arith.constant 0 : index
    %c0_33 = arith.constant 0 : index
    %17 = vector.load %arg5[%c0_31, %c0_32, %c0_33] : memref<1x1x4xf32, #tpu.memory_space<vmem>>, vector<1x1x4xf32>
    %18 = vector.broadcast %17 : vector<1x1x4xf32> to vector<16x16x4xf32>
    %19 = arith.addf %16, %18 : vector<16x16x4xf32>
    %cst_34 = arith.constant 0.000000e+00 : f32
    %20 = vector.broadcast %cst_34 : f32 to vector<16x16x4xf32>
    %21 = arith.cmpf oge, %19, %20 : vector<16x16x4xf32>
    %cst_35 = arith.constant 0.00999999977 : f32
    %22 = vector.broadcast %cst_35 : f32 to vector<16x16x4xf32>
    %23 = arith.mulf %22, %19 : vector<16x16x4xf32>
    %24 = arith.select %21, %19, %23 : vector<16x16x4xi1>, vector<16x16x4xf32>
    %c1 = arith.constant 1 : index
    %c1_36 = arith.constant 1 : index
    %c0_37 = arith.constant 0 : index
    %25 = vector.load %arg10[%c1, %c1_36, %c0_37] : memref<18x18x4xf32, #tpu.memory_space<vmem>>, vector<16x16x4xf32>
    tpu.vector_store %arg10[%c1, %c1_36, %c0_37], %24 {strides = array<i32>} : memref<18x18x4xf32, #tpu.memory_space<vmem>>, vector<16x16x4xf32>,
    %c0_38 = arith.constant 0 : index
    %c0_39 = arith.constant 0 : index
    %c0_40 = arith.constant 0 : index
    %26 = tpu.strided_load %arg10[%c0_38, %c0_39, %c0_40] {strides = array<i32: 2, 2, 1>} : memref<18x18x4xf32, #tpu.memory_space<vmem>>, vector<8x8x4xf32>
    %27 = vector.shape_cast %26 : vector<8x8x4xf32> to vector<64x4xf32>
    %28 = arith.truncf %27 : vector<64x4xf32> to vector<64x4xbf16>
    %c0_41 = arith.constant 0 : index
    %c0_42 = arith.constant 0 : index
    %29 = vector.load %arg12[%c0_41, %c0_42] : memref<64x36xbf16, #tpu.memory_space<vmem>>, vector<64x4xbf16>
    tpu.vector_store %arg12[%c0_41, %c0_42], %28 {strides = array<i32>} : memref<64x36xbf16, #tpu.memory_space<vmem>>, vector<64x4xbf16>,
    %c0_43 = arith.constant 0 : index
    %c1_44 = arith.constant 1 : index
    %c0_45 = arith.constant 0 : index
    %30 = tpu.strided_load %arg10[%c0_43, %c1_44, %c0_45] {strides = array<i32: 2, 2, 1>} : memref<18x18x4xf32, #tpu.memory_space<vmem>>, vector<8x8x4xf32>
    %31 = vector.shape_cast %30 : vector<8x8x4xf32> to vector<64x4xf32>
    %32 = arith.truncf %31 : vector<64x4xf32> to vector<64x4xbf16>
    %c0_46 = arith.constant 0 : index
    %c4 = arith.constant 4 : index
    %33 = vector.load %arg12[%c0_46, %c4] : memref<64x36xbf16, #tpu.memory_space<vmem>>, vector<64x4xbf16>
    tpu.vector_store %arg12[%c0_46, %c4], %32 {strides = array<i32>} : memref<64x36xbf16, #tpu.memory_space<vmem>>, vector<64x4xbf16>,
    %c0_47 = arith.constant 0 : index
    %c2 = arith.constant 2 : index
    %c0_48 = arith.constant 0 : index
    %34 = tpu.strided_load %arg10[%c0_47, %c2, %c0_48] {strides = array<i32: 2, 2, 1>} : memref<18x18x4xf32, #tpu.memory_space<vmem>>, vector<8x8x4xf32>
    %35 = vector.shape_cast %34 : vector<8x8x4xf32> to vector<64x4xf32>
    %36 = arith.truncf %35 : vector<64x4xf32> to vector<64x4xbf16>
    %c0_49 = arith.constant 0 : index
    %c8 = arith.constant 8 : index
    %37 = vector.load %arg12[%c0_49, %c8] : memref<64x36xbf16, #tpu.memory_space<vmem>>, vector<64x4xbf16>
    tpu.vector_store %arg12[%c0_49, %c8], %36 {strides = array<i32>} : memref<64x36xbf16, #tpu.memory_space<vmem>>, vector<64x4xbf16>,
    %c1_50 = arith.constant 1 : index
    %c0_51 = arith.constant 0 : index
    %c0_52 = arith.constant 0 : index
    %38 = tpu.strided_load %arg10[%c1_50, %c0_51, %c0_52] {strides = array<i32: 2, 2, 1>} : memref<18x18x4xf32, #tpu.memory_space<vmem>>, vector<8x8x4xf32>
    %39 = vector.shape_cast %38 : vector<8x8x4xf32> to vector<64x4xf32>
    %40 = arith.truncf %39 : vector<64x4xf32> to vector<64x4xbf16>
    %c0_53 = arith.constant 0 : index
    %c12 = arith.constant 12 : index
    %41 = vector.load %arg12[%c0_53, %c12] : memref<64x36xbf16, #tpu.memory_space<vmem>>, vector<64x4xbf16>
    tpu.vector_store %arg12[%c0_53, %c12], %40 {strides = array<i32>} : memref<64x36xbf16, #tpu.memory_space<vmem>>, vector<64x4xbf16>,
    %c1_54 = arith.constant 1 : index
    %c1_55 = arith.constant 1 : index
    %c0_56 = arith.constant 0 : index
    %42 = tpu.strided_load %arg10[%c1_54, %c1_55, %c0_56] {strides = array<i32: 2, 2, 1>} : memref<18x18x4xf32, #tpu.memory_space<vmem>>, vector<8x8x4xf32>
    %43 = vector.shape_cast %42 : vector<8x8x4xf32> to vector<64x4xf32>
    %44 = arith.truncf %43 : vector<64x4xf32> to vector<64x4xbf16>
    %c0_57 = arith.constant 0 : index
    %c16 = arith.constant 16 : index
    %45 = vector.load %arg12[%c0_57, %c16] : memref<64x36xbf16, #tpu.memory_space<vmem>>, vector<64x4xbf16>
    tpu.vector_store %arg12[%c0_57, %c16], %44 {strides = array<i32>} : memref<64x36xbf16, #tpu.memory_space<vmem>>, vector<64x4xbf16>,
    %c1_58 = arith.constant 1 : index
    %c2_59 = arith.constant 2 : index
    %c0_60 = arith.constant 0 : index
    %46 = tpu.strided_load %arg10[%c1_58, %c2_59, %c0_60] {strides = array<i32: 2, 2, 1>} : memref<18x18x4xf32, #tpu.memory_space<vmem>>, vector<8x8x4xf32>
    %47 = vector.shape_cast %46 : vector<8x8x4xf32> to vector<64x4xf32>
    %48 = arith.truncf %47 : vector<64x4xf32> to vector<64x4xbf16>
    %c0_61 = arith.constant 0 : index
    %c20 = arith.constant 20 : index
    %49 = vector.load %arg12[%c0_61, %c20] : memref<64x36xbf16, #tpu.memory_space<vmem>>, vector<64x4xbf16>
    tpu.vector_store %arg12[%c0_61, %c20], %48 {strides = array<i32>} : memref<64x36xbf16, #tpu.memory_space<vmem>>, vector<64x4xbf16>,
    %c2_62 = arith.constant 2 : index
    %c0_63 = arith.constant 0 : index
    %c0_64 = arith.constant 0 : index
    %50 = tpu.strided_load %arg10[%c2_62, %c0_63, %c0_64] {strides = array<i32: 2, 2, 1>} : memref<18x18x4xf32, #tpu.memory_space<vmem>>, vector<8x8x4xf32>
    %51 = vector.shape_cast %50 : vector<8x8x4xf32> to vector<64x4xf32>
    %52 = arith.truncf %51 : vector<64x4xf32> to vector<64x4xbf16>
    %c0_65 = arith.constant 0 : index
    %c24 = arith.constant 24 : index
    %53 = vector.load %arg12[%c0_65, %c24] : memref<64x36xbf16, #tpu.memory_space<vmem>>, vector<64x4xbf16>
    tpu.vector_store %arg12[%c0_65, %c24], %52 {strides = array<i32>} : memref<64x36xbf16, #tpu.memory_space<vmem>>, vector<64x4xbf16>,
    %c2_66 = arith.constant 2 : index
    %c1_67 = arith.constant 1 : index
    %c0_68 = arith.constant 0 : index
    %54 = tpu.strided_load %arg10[%c2_66, %c1_67, %c0_68] {strides = array<i32: 2, 2, 1>} : memref<18x18x4xf32, #tpu.memory_space<vmem>>, vector<8x8x4xf32>
    %55 = vector.shape_cast %54 : vector<8x8x4xf32> to vector<64x4xf32>
    %56 = arith.truncf %55 : vector<64x4xf32> to vector<64x4xbf16>
    %c0_69 = arith.constant 0 : index
    %c28 = arith.constant 28 : index
    %57 = vector.load %arg12[%c0_69, %c28] : memref<64x36xbf16, #tpu.memory_space<vmem>>, vector<64x4xbf16>
    tpu.vector_store %arg12[%c0_69, %c28], %56 {strides = array<i32>} : memref<64x36xbf16, #tpu.memory_space<vmem>>, vector<64x4xbf16>,
    %c2_70 = arith.constant 2 : index
    %c2_71 = arith.constant 2 : index
    %c0_72 = arith.constant 0 : index
    %58 = tpu.strided_load %arg10[%c2_70, %c2_71, %c0_72] {strides = array<i32: 2, 2, 1>} : memref<18x18x4xf32, #tpu.memory_space<vmem>>, vector<8x8x4xf32>
    %59 = vector.shape_cast %58 : vector<8x8x4xf32> to vector<64x4xf32>
    %60 = arith.truncf %59 : vector<64x4xf32> to vector<64x4xbf16>
    %c0_73 = arith.constant 0 : index
    %c32 = arith.constant 32 : index
    %61 = vector.load %arg12[%c0_73, %c32] : memref<64x36xbf16, #tpu.memory_space<vmem>>, vector<64x4xbf16>
    tpu.vector_store %arg12[%c0_73, %c32], %60 {strides = array<i32>} : memref<64x36xbf16, #tpu.memory_space<vmem>>, vector<64x4xbf16>,
    %c0_74 = arith.constant 0 : index
    %c0_75 = arith.constant 0 : index
    %62 = vector.load %arg12[%c0_74, %c0_75] : memref<64x36xbf16, #tpu.memory_space<vmem>>, vector<64x36xbf16>
    %c0_76 = arith.constant 0 : index
    %c0_77 = arith.constant 0 : index
    %63 = vector.load %arg2[%c0_76, %c0_77] : memref<36x8xbf16, #tpu.memory_space<vmem>>, vector<36x8xbf16>
    %cst_78 = arith.constant dense<0.000000e+00> : vector<64x8xf32>
    %64 = tpu.matmul %62, %63, %cst_78 {dimension_numbers = #tpu.dot_dimension_numbers<[1], [0], [0], [1], [0, 0, 1, 1], [], []>} : vector<64x36xbf16>, vector<36x8xbf16>, vector<64x8xf32> -> vector<64x8xf32>
    %65 = vector.shape_cast %64 : vector<64x8xf32> to vector<8x8x8xf32>
    %c0_79 = arith.constant 0 : index
    %c0_80 = arith.constant 0 : index
    %c0_81 = arith.constant 0 : index
    %66 = vector.load %arg6[%c0_79, %c0_80, %c0_81] : memref<1x1x8xf32, #tpu.memory_space<vmem>>, vector<1x1x8xf32>
    %67 = vector.broadcast %66 : vector<1x1x8xf32> to vector<8x8x8xf32>
    %68 = arith.mulf %65, %67 : vector<8x8x8xf32>
    %c0_82 = arith.constant 0 : index
    %c0_83 = arith.constant 0 : index
    %c0_84 = arith.constant 0 : index
    %69 = vector.load %arg7[%c0_82, %c0_83, %c0_84] : memref<1x1x8xf32, #tpu.memory_space<vmem>>, vector<1x1x8xf32>
    %70 = vector.broadcast %69 : vector<1x1x8xf32> to vector<8x8x8xf32>
    %71 = arith.addf %68, %70 : vector<8x8x8xf32>
    %cst_85 = arith.constant 0.000000e+00 : f32
    %72 = vector.broadcast %cst_85 : f32 to vector<8x8x8xf32>
    %73 = arith.cmpf oge, %71, %72 : vector<8x8x8xf32>
    %cst_86 = arith.constant 0.00999999977 : f32
    %74 = vector.broadcast %cst_86 : f32 to vector<8x8x8xf32>
    %75 = arith.mulf %74, %71 : vector<8x8x8xf32>
    %76 = arith.select %73, %71, %75 : vector<8x8x8xi1>, vector<8x8x8xf32>
    %c1_87 = arith.constant 1 : index
    %c1_88 = arith.constant 1 : index
    %c0_89 = arith.constant 0 : index
    %77 = vector.load %arg11[%c1_87, %c1_88, %c0_89] : memref<10x10x8xf32, #tpu.memory_space<vmem>>, vector<8x8x8xf32>
    tpu.vector_store %arg11[%c1_87, %c1_88, %c0_89], %76 {strides = array<i32>} : memref<10x10x8xf32, #tpu.memory_space<vmem>>, vector<8x8x8xf32>,
    %c0_90 = arith.constant 0 : index
    %c0_91 = arith.constant 0 : index
    %c0_92 = arith.constant 0 : index
    %78 = vector.load %arg11[%c0_90, %c0_91, %c0_92] : memref<10x10x8xf32, #tpu.memory_space<vmem>>, vector<8x8x8xf32>
    %79 = vector.shape_cast %78 : vector<8x8x8xf32> to vector<64x8xf32>
    %80 = arith.truncf %79 : vector<64x8xf32> to vector<64x8xbf16>
    %c0_93 = arith.constant 0 : index
    %c0_94 = arith.constant 0 : index
    %81 = vector.load %arg13[%c0_93, %c0_94] : memref<64x72xbf16, #tpu.memory_space<vmem>>, vector<64x8xbf16>
    tpu.vector_store %arg13[%c0_93, %c0_94], %80 {strides = array<i32>} : memref<64x72xbf16, #tpu.memory_space<vmem>>, vector<64x8xbf16>,
    %c0_95 = arith.constant 0 : index
    %c1_96 = arith.constant 1 : index
    %c0_97 = arith.constant 0 : index
    %82 = vector.load %arg11[%c0_95, %c1_96, %c0_97] : memref<10x10x8xf32, #tpu.memory_space<vmem>>, vector<8x8x8xf32>
    %83 = vector.shape_cast %82 : vector<8x8x8xf32> to vector<64x8xf32>
    %84 = arith.truncf %83 : vector<64x8xf32> to vector<64x8xbf16>
    %c0_98 = arith.constant 0 : index
    %c8_99 = arith.constant 8 : index
    %85 = vector.load %arg13[%c0_98, %c8_99] : memref<64x72xbf16, #tpu.memory_space<vmem>>, vector<64x8xbf16>
    tpu.vector_store %arg13[%c0_98, %c8_99], %84 {strides = array<i32>} : memref<64x72xbf16, #tpu.memory_space<vmem>>, vector<64x8xbf16>,
    %c0_100 = arith.constant 0 : index
    %c2_101 = arith.constant 2 : index
    %c0_102 = arith.constant 0 : index
    %86 = vector.load %arg11[%c0_100, %c2_101, %c0_102] : memref<10x10x8xf32, #tpu.memory_space<vmem>>, vector<8x8x8xf32>
    %87 = vector.shape_cast %86 : vector<8x8x8xf32> to vector<64x8xf32>
    %88 = arith.truncf %87 : vector<64x8xf32> to vector<64x8xbf16>
    %c0_103 = arith.constant 0 : index
    %c16_104 = arith.constant 16 : index
    %89 = vector.load %arg13[%c0_103, %c16_104] : memref<64x72xbf16, #tpu.memory_space<vmem>>, vector<64x8xbf16>
    tpu.vector_store %arg13[%c0_103, %c16_104], %88 {strides = array<i32>} : memref<64x72xbf16, #tpu.memory_space<vmem>>, vector<64x8xbf16>,
    %c1_105 = arith.constant 1 : index
    %c0_106 = arith.constant 0 : index
    %c0_107 = arith.constant 0 : index
    %90 = vector.load %arg11[%c1_105, %c0_106, %c0_107] : memref<10x10x8xf32, #tpu.memory_space<vmem>>, vector<8x8x8xf32>
    %91 = vector.shape_cast %90 : vector<8x8x8xf32> to vector<64x8xf32>
    %92 = arith.truncf %91 : vector<64x8xf32> to vector<64x8xbf16>
    %c0_108 = arith.constant 0 : index
    %c24_109 = arith.constant 24 : index
    %93 = vector.load %arg13[%c0_108, %c24_109] : memref<64x72xbf16, #tpu.memory_space<vmem>>, vector<64x8xbf16>
    tpu.vector_store %arg13[%c0_108, %c24_109], %92 {strides = array<i32>} : memref<64x72xbf16, #tpu.memory_space<vmem>>, vector<64x8xbf16>,
    %c1_110 = arith.constant 1 : index
    %c1_111 = arith.constant 1 : index
    %c0_112 = arith.constant 0 : index
    %94 = vector.load %arg11[%c1_110, %c1_111, %c0_112] : memref<10x10x8xf32, #tpu.memory_space<vmem>>, vector<8x8x8xf32>
    %95 = vector.shape_cast %94 : vector<8x8x8xf32> to vector<64x8xf32>
    %96 = arith.truncf %95 : vector<64x8xf32> to vector<64x8xbf16>
    %c0_113 = arith.constant 0 : index
    %c32_114 = arith.constant 32 : index
    %97 = vector.load %arg13[%c0_113, %c32_114] : memref<64x72xbf16, #tpu.memory_space<vmem>>, vector<64x8xbf16>
    tpu.vector_store %arg13[%c0_113, %c32_114], %96 {strides = array<i32>} : memref<64x72xbf16, #tpu.memory_space<vmem>>, vector<64x8xbf16>,
    %c1_115 = arith.constant 1 : index
    %c2_116 = arith.constant 2 : index
    %c0_117 = arith.constant 0 : index
    %98 = vector.load %arg11[%c1_115, %c2_116, %c0_117] : memref<10x10x8xf32, #tpu.memory_space<vmem>>, vector<8x8x8xf32>
    %99 = vector.shape_cast %98 : vector<8x8x8xf32> to vector<64x8xf32>
    %100 = arith.truncf %99 : vector<64x8xf32> to vector<64x8xbf16>
    %c0_118 = arith.constant 0 : index
    %c40 = arith.constant 40 : index
    %101 = vector.load %arg13[%c0_118, %c40] : memref<64x72xbf16, #tpu.memory_space<vmem>>, vector<64x8xbf16>
    tpu.vector_store %arg13[%c0_118, %c40], %100 {strides = array<i32>} : memref<64x72xbf16, #tpu.memory_space<vmem>>, vector<64x8xbf16>,
    %c2_119 = arith.constant 2 : index
    %c0_120 = arith.constant 0 : index
    %c0_121 = arith.constant 0 : index
    %102 = vector.load %arg11[%c2_119, %c0_120, %c0_121] : memref<10x10x8xf32, #tpu.memory_space<vmem>>, vector<8x8x8xf32>
    %103 = vector.shape_cast %102 : vector<8x8x8xf32> to vector<64x8xf32>
    %104 = arith.truncf %103 : vector<64x8xf32> to vector<64x8xbf16>
    %c0_122 = arith.constant 0 : index
    %c48 = arith.constant 48 : index
    %105 = vector.load %arg13[%c0_122, %c48] : memref<64x72xbf16, #tpu.memory_space<vmem>>, vector<64x8xbf16>
    tpu.vector_store %arg13[%c0_122, %c48], %104 {strides = array<i32>} : memref<64x72xbf16, #tpu.memory_space<vmem>>, vector<64x8xbf16>,
    %c2_123 = arith.constant 2 : index
    %c1_124 = arith.constant 1 : index
    %c0_125 = arith.constant 0 : index
    %106 = vector.load %arg11[%c2_123, %c1_124, %c0_125] : memref<10x10x8xf32, #tpu.memory_space<vmem>>, vector<8x8x8xf32>
    %107 = vector.shape_cast %106 : vector<8x8x8xf32> to vector<64x8xf32>
    %108 = arith.truncf %107 : vector<64x8xf32> to vector<64x8xbf16>
    %c0_126 = arith.constant 0 : index
    %c56 = arith.constant 56 : index
    %109 = vector.load %arg13[%c0_126, %c56] : memref<64x72xbf16, #tpu.memory_space<vmem>>, vector<64x8xbf16>
    tpu.vector_store %arg13[%c0_126, %c56], %108 {strides = array<i32>} : memref<64x72xbf16, #tpu.memory_space<vmem>>, vector<64x8xbf16>,
    %c2_127 = arith.constant 2 : index
    %c2_128 = arith.constant 2 : index
    %c0_129 = arith.constant 0 : index
    %110 = vector.load %arg11[%c2_127, %c2_128, %c0_129] : memref<10x10x8xf32, #tpu.memory_space<vmem>>, vector<8x8x8xf32>
    %111 = vector.shape_cast %110 : vector<8x8x8xf32> to vector<64x8xf32>
    %112 = arith.truncf %111 : vector<64x8xf32> to vector<64x8xbf16>
    %c0_130 = arith.constant 0 : index
    %c64 = arith.constant 64 : index
    %113 = vector.load %arg13[%c0_130, %c64] : memref<64x72xbf16, #tpu.memory_space<vmem>>, vector<64x8xbf16>
    tpu.vector_store %arg13[%c0_130, %c64], %112 {strides = array<i32>} : memref<64x72xbf16, #tpu.memory_space<vmem>>, vector<64x8xbf16>,
    %c0_131 = arith.constant 0 : index
    %c0_132 = arith.constant 0 : index
    %114 = vector.load %arg13[%c0_131, %c0_132] : memref<64x72xbf16, #tpu.memory_space<vmem>>, vector<64x72xbf16>
    %c0_133 = arith.constant 0 : index
    %c0_134 = arith.constant 0 : index
    %115 = vector.load %arg3[%c0_133, %c0_134] : memref<72x8xbf16, #tpu.memory_space<vmem>>, vector<72x8xbf16>
    %cst_135 = arith.constant dense<0.000000e+00> : vector<64x8xf32>
    %116 = tpu.matmul %114, %115, %cst_135 {dimension_numbers = #tpu.dot_dimension_numbers<[1], [0], [0], [1], [0, 0, 1, 1], [], []>} : vector<64x72xbf16>, vector<72x8xbf16>, vector<64x8xf32> -> vector<64x8xf32>
    %c1_136 = arith.constant 1 : index
    %c1_137 = arith.constant 1 : index
    %c0_138 = arith.constant 0 : index
    %117 = tpu.strided_load %arg10[%c1_136, %c1_137, %c0_138] {strides = array<i32: 2, 2, 1>} : memref<18x18x4xf32, #tpu.memory_space<vmem>>, vector<8x8x4xf32>
    %118 = vector.shape_cast %117 : vector<8x8x4xf32> to vector<64x4xf32>
    %119 = arith.truncf %118 : vector<64x4xf32> to vector<64x4xbf16>
    %c0_139 = arith.constant 0 : index
    %c0_140 = arith.constant 0 : index
    %120 = vector.load %arg8[%c0_139, %c0_140] : memref<4x8xbf16, #tpu.memory_space<vmem>>, vector<4x8xbf16>
    %cst_141 = arith.constant dense<0.000000e+00> : vector<64x8xf32>
    %121 = tpu.matmul %119, %120, %cst_141 {dimension_numbers = #tpu.dot_dimension_numbers<[1], [0], [0], [1], [0, 0, 1, 1], [], []>} : vector<64x4xbf16>, vector<4x8xbf16>, vector<64x8xf32> -> vector<64x8xf32>
    %122 = arith.addf %116, %121 : vector<64x8xf32>
    %123 = vector.shape_cast %122 : vector<64x8xf32> to vector<8x8x8xf32>
    %c0_142 = arith.constant 0 : index
    %c0_143 = arith.constant 0 : index
    %c0_144 = arith.constant 0 : index
    %c0_145 = arith.constant 0 : index
    %124 = vector.load %arg9[%c0_142, %c0_143, %c0_144, %c0_145] : memref<1x8x8x8xf32, #tpu.memory_space<vmem>>, vector<1x8x8x8xf32>
    %125 = vector.shape_cast %124 : vector<1x8x8x8xf32> to vector<8x8x8xf32>
    %126 = vector.shape_cast %123 : vector<8x8x8xf32> to vector<1x8x8x8xf32>
    tpu.vector_store %arg9[%c0_142, %c0_143, %c0_144, %c0_145], %126 {strides = array<i32>} : memref<1x8x8x8xf32, #tpu.memory_space<vmem>>, vector<1x8x8x8xf32>,
    return
  }
  func.func @transform_0(%arg0: i32) -> (i32, i32, i32, i32) {
    %c0_i32 = arith.constant 0 : i32
    %c0_i32_0 = arith.constant 0 : i32
    %c0_i32_1 = arith.constant 0 : i32
    %c0_i32_2 = arith.constant 0 : i32
    return %arg0, %c0_i32, %c0_i32_0, %c0_i32_1 : i32, i32, i32, i32
  }
  func.func @transform_1(%arg0: i32) -> (i32, i32) {
    %c0_i32 = arith.constant 0 : i32
    %c0_i32_0 = arith.constant 0 : i32
    %c0_i32_1 = arith.constant 0 : i32
    return %c0_i32, %c0_i32_0 : i32, i32
  }
  func.func @transform_2(%arg0: i32) -> (i32, i32) {
    %c0_i32 = arith.constant 0 : i32
    %c0_i32_0 = arith.constant 0 : i32
    %c0_i32_1 = arith.constant 0 : i32
    return %c0_i32, %c0_i32_0 : i32, i32
  }
  func.func @transform_3(%arg0: i32) -> (i32, i32, i32) {
    %c0_i32 = arith.constant 0 : i32
    %c0_i32_0 = arith.constant 0 : i32
    %c0_i32_1 = arith.constant 0 : i32
    %c0_i32_2 = arith.constant 0 : i32
    return %c0_i32, %c0_i32_0, %c0_i32_1 : i32, i32, i32
  }
  func.func @transform_4(%arg0: i32) -> (i32, i32, i32) {
    %c0_i32 = arith.constant 0 : i32
    %c0_i32_0 = arith.constant 0 : i32
    %c0_i32_1 = arith.constant 0 : i32
    %c0_i32_2 = arith.constant 0 : i32
    return %c0_i32, %c0_i32_0, %c0_i32_1 : i32, i32, i32
  }
  func.func @transform_5(%arg0: i32) -> (i32, i32, i32) {
    %c0_i32 = arith.constant 0 : i32
    %c0_i32_0 = arith.constant 0 : i32
    %c0_i32_1 = arith.constant 0 : i32
    %c0_i32_2 = arith.constant 0 : i32
    return %c0_i32, %c0_i32_0, %c0_i32_1 : i32, i32, i32
  }
  func.func @transform_6(%arg0: i32) -> (i32, i32, i32) {
    %c0_i32 = arith.constant 0 : i32
    %c0_i32_0 = arith.constant 0 : i32
    %c0_i32_1 = arith.constant 0 : i32
    %c0_i32_2 = arith.constant 0 : i32
    return %c0_i32, %c0_i32_0, %c0_i32_1 : i32, i32, i32
  }
  func.func @transform_7(%arg0: i32) -> (i32, i32) {
    %c0_i32 = arith.constant 0 : i32
    %c0_i32_0 = arith.constant 0 : i32
    %c0_i32_1 = arith.constant 0 : i32
    return %c0_i32, %c0_i32_0 : i32, i32
  }
  func.func @transform_8(%arg0: i32) -> (i32, i32, i32, i32) {
    %c0_i32 = arith.constant 0 : i32
    %c0_i32_0 = arith.constant 0 : i32
    %c0_i32_1 = arith.constant 0 : i32
    %c0_i32_2 = arith.constant 0 : i32
    return %arg0, %c0_i32, %c0_i32_0, %c0_i32_1 : i32, i32, i32, i32
  }
}

</mosaic_0001>

<bundles_post_ra>
// kernel: tpu_custom_call.1
= control target key start
LH: loop header
LB: loop body
LE: loop exit
PB: predicated region body
PF: predicated region fallthrough
CT: control target
= control target key end

     0   :  { %13 = vsyncpa [#allocation7], 0  ;;  %s3068_s0 = inlined_call_operand.vmem [shape: f32[2,16,16,4], index: 0, kind: input, shape index: {}]   ;;  %s3069_s1 = inlined_call_operand.vmem [shape: bf16[36,8], index: 1, kind: input, shape index: {}]   ;;  %s3070_s2 = inlined_call_operand.vmem [shape: bf16[72,8], index: 2, kind: input, shape index: {}]   ;;  %s3071_s3 = inlined_call_operand.vmem [shape: f32[1,1,4], index: 3, kind: input, shape index: {}]   ;;  %s3072_s4 = inlined_call_operand.vmem [shape: f32[1,1,4], index: 4, kind: input, shape index: {}]   ;;  %s3073_s5 = inlined_call_operand.vmem [shape: f32[1,1,8], index: 5, kind: input, shape index: {}]   ;;  %s3074_s6 = inlined_call_operand.vmem [shape: f32[1,1,8], index: 6, kind: input, shape index: {}]   ;;  %s3075_s7 = inlined_call_operand.vmem [shape: bf16[4,8], index: 7, kind: input, shape index: {}]   ;;  %s3076_s8 = inlined_call_operand.hbm [shape: f32[2,8,8,8], index: 8, kind: output, shape index: {}]  }
   0x1   :  { %15 = vsyncpa [#allocation7 + $0x1], 0  ;;  %s2376_s27 = smov 0   ;;  %s2378_s28 = smov 0  }
   0x2   :  { %s2380_s29 = smov 0   ;;  %s2382_s30 = smov 0  }
   0x3 LB: > { %s2397_s9 = sadd.s32 4294967295, %s2315_s30   ;;  %s2095_s10 = sadd.s32 4294967294, %s2315_s30   ;;  %s2315_s30 = sphi %s2382_s30, %s3082_s30   ;;  %s2311_s29 = sphi %s2380_s29, %s3081_s29   ;;  %s2307_s28 = sphi %s2378_s28, %s3080_s28   ;;  %s2303_s27 = sphi %s2376_s27, %s3079_s27  }
   0x4   : > { %s2401_s11 = sadd.s32 1, %s2315_s30   ;;  %s201_s12 = sadd.s32 1, %s2311_s29 }
   0x5   : > { %s198_s13 = ssub.s32 %s2315_s30, %s2401_s11  ;;  %p211_p0 = scmp.ne.s32.totalorder %s2311_s29, %s2307_s28 }
   0x6   : > { %p199_p1 = scmp.eq.s32.totalorder %s198_s13, 0  ;;  %p212_p2 = scmp.eq.s32.totalorder %s2397_s9, 1 }
   0x7   : > { %p217_p3 = scmp.ne.s32.totalorder %s2307_s28, %s2303_s27  ;;  %p218_p4 = scmp.eq.s32.totalorder %s2095_s10, 1 }
   0x8   : > { %s2412_s14 = scalar_select %p199_p1, %s2311_s29, %s201_s12  }
   0x9   : > { %p2414_p5 = por %p212_p2, %p211_p0  ;;  %p2418_p6 = por %p218_p4, %p217_p3 }
   0xa   : > { %p2098_p7 = scmp.ge.s32.totalorder %s2315_s30, 1  ;;  %p265_p8 = scmp.lt.s32.totalorder %s2315_s30, 3 }
   0xc   : > { %p266_p9 = pnand %p2098_p7, %p265_p8 }
   0xd   : > { %p299_p10 = scmp.lt.s32.totalorder (!%p266_p9), %s2397_s9, 1  ;;  %s2318_s17 = smov (!%p266_p9), 4  }
   0xe   : > { %269 = sbr.rel (%p266_p9) target bundleno = 786 (0x312), region = 52  ;;  %s2319_s18 = smov (!%p266_p9), 8  }
   0xf   : > { %s2320_s12 = smov (!%p266_p9), 12   ;;  %s2321_s13 = smov (!%p266_p9), 16  }
  0x10   : > { %s2324_s21 = smov (!%p266_p9), 28   ;;  %s2325_s22 = smov (!%p266_p9), 32  }
  0x11   : > { %s2328_s26 = smov (!%p266_p9), 40   ;;  %s2329_s10 = smov (!%p266_p9), 64  }
  0x12   : > { %s2190_s24 = sshll.u32 (!%p266_p9), %s2397_s9, 6 }
  0x13   : > { %vm305_vm0 = vcmask 31744   ;;  %vm308_vm1 = vcmask 25600   ;;  %v2317_v0 = vmov 0.0   ;;  %vm314_vm2 = vcmask 24576   ;;  %s300_s19 = scalar_select %p299_p10, %s2397_s9, 1 }
  0x14   : > { %306 = vst.msk [vmem:[#allocation2] sm:$0xff] %vm305_vm0, %v2317_v0  ;;  %v2441_v5 = vld [vmem:[%s3071_s3] ss:$0 sm:$0xff] }
  0x15   : > { %307 = vst.msk [vmem:[#allocation2 + $0x8] sm:$0xff] %vm305_vm0, %v2317_v0  ;;  %s2175_s20 = sshll.u32 %s300_s19, 8  ;;  %v2456_v10 = vld [vmem:[%s3072_s4] ss:$0 sm:$0xff]  ;;  %s2322_s19 = smov 24  }
  0x16   : > { %309 = vst.msk [vmem:[#allocation2 + $0x10] sm:$0x3] %vm308_vm1, %v2317_v0  ;;  %s2436_s23 = scalar_lea.vmem %s3068_s0, %s2175_s20  ;;  %s2323_s20 = smov 20  }
  0x17   : > { %315 = vst.msk [vmem:[#allocation2] sm:$0x1] %vm314_vm2, %v2317_v0  ;;  %v381_v6 = vld [vmem:[%s2436_s23 + $0x10] sm:$0xff]  ;;  %v382_v7 = vld [vmem:[%s2436_s23 + $0x18] sm:$0xff]  ;;  %v383_v8 = vld [vmem:[%s2436_s23 + $0x20] sm:$0xff] }
  0x18   : > { %316 = vst.msk [vmem:[#allocation2 + $0x18] sm:$0x1] %vm314_vm2, %v2317_v0  ;;  %v417_v9 = vmul.f32 %v2441_v5, %v381_v6  ;;  %v384_v11 = vld [vmem:[%s2436_s23 + $0x28] sm:$0xff]  ;;  %v418_v12 = vmul.f32 %v2441_v5, %v382_v7  ;;  %v379_v13 = vld [vmem:[%s2436_s23] sm:$0xff]  ;;  %v419_v14 = vmul.f32 %v2441_v5, %v383_v8  ;;  %v385_v17 = vld [vmem:[%s2436_s23 + $0x30] sm:$0xff] }
  0x19   : > { %317 = vst.msk [vmem:[#allocation2 + $0x30] sm:$0x1] %vm314_vm2, %v2317_v0  ;;  %v380_v15 = vld [vmem:[%s2436_s23 + $0x8] sm:$0xff]  ;;  %v420_v16 = vmul.f32 %v2441_v5, %v384_v11  ;;  %v415_v19 = vmul.f32 %v2441_v5, %v379_v13  ;;  %v386_v20 = vld [vmem:[%s2436_s23 + $0x38] sm:$0xff]  ;;  %v421_v24 = vmul.f32 %v2441_v5, %v385_v17  ;;  %v389_v44 = vld [vmem:[%s2436_s23 + $0x50] sm:$0xff] }
  0x1a   : > { %318 = vst.msk [vmem:[#allocation2 + $0x48] sm:$0x1] %vm314_vm2, %v2317_v0  ;;  %v453_v18 = vadd.f32 %v2456_v10, %v417_v9  ;;  %v454_v21 = vadd.f32 %v2456_v10, %v418_v12  ;;  %v416_v22 = vmul.f32 %v2441_v5, %v380_v15  ;;  %v455_v23 = vadd.f32 %v2456_v10, %v419_v14  ;;  %v390_v45 = vld [vmem:[%s2436_s23 + $0x58] sm:$0xff]  ;;  %v387_v61 = vld [vmem:[%s2436_s23 + $0x40] sm:$0xff]  ;;  %v388_v62 = vld [vmem:[%s2436_s23 + $0x48] sm:$0xff] }
  0x1b   : > { %319 = vst.msk [vmem:[#allocation2 + $0x60] sm:$0x1] %vm314_vm2, %v2317_v0  ;;  %v456_v25 = vadd.f32 %v2456_v10, %v420_v16  ;;  %v422_v26 = vmul.f32 %v2441_v5, %v386_v20  ;;  %v451_v28 = vadd.f32 %v2456_v10, %v415_v19  ;;  %v457_v32 = vadd.f32 %v2456_v10, %v421_v24 }
  0x1c   : > { %v645_v1 = vld [vmem:[#allocation2 + $0x1] ss:$2 sm:$0xff]  ;;  %320 = vst.msk [vmem:[#allocation2 + $0x78] sm:$0x1] %vm314_vm2, %v2317_v0  ;;  %v517_v27 = vmul.f32 0.01, %v453_v18  ;;  %v452_v30 = vadd.f32 %v2456_v10, %v416_v22  ;;  %v425_v47 = vmul.f32 %v2441_v5, %v389_v44  ;;  %v426_v48 = vmul.f32 %v2441_v5, %v390_v45 }
  0x1d   : > { %v710_v2 = vld [vmem:[#allocation2 + $0x2] ss:$2 sm:$0xff]  ;;  %v660_v3 = vpack.c.bf16 %v645_v1, %v645_v1  ;;  %321 = vst.msk [vmem:[#allocation2 + $0x90] sm:$0x1] %vm314_vm2, %v2317_v0  ;;  %vm485_vm3 = vcmp.ge.f32.partialorder %v453_v18, 0.0  ;;  %vm486_vm4 = vcmp.ge.f32.partialorder %v454_v21, 0.0  ;;  %v458_v34 = vadd.f32 %v2456_v10, %v422_v26 }
  0x1e   : > { %v725_v4 = vpack.c.bf16 %v710_v2, %v710_v2  ;;  %322 = vst.msk [vmem:[#allocation2 + $0xa8] sm:$0x1] %vm314_vm2, %v2317_v0  ;;  %v518_v29 = vmul.f32 0.01, %v454_v21  ;;  %v519_v31 = vmul.f32 0.01, %v455_v23  ;;  %v549_v35 = vsel %vm485_vm3, %v453_v18, %v517_v27 }
  0x1f   : > { %676 = vrot.lane.b32.xlu0 %v660_v3, %s2318_s17  ;;  %323 = vst.msk [vmem:[#allocation2 + $0xc0] sm:$0x1] %vm314_vm2, %v2317_v0  ;;  %vm487_vm5 = vcmp.ge.f32.partialorder %v455_v23, 0.0  ;;  %v520_v33 = vmul.f32 0.01, %v456_v25  ;;  %vm488_vm6 = vcmp.ge.f32.partialorder %v456_v25, 0.0  ;;  %v461_v51 = vadd.f32 %v2456_v10, %v425_v47 }
  0x20   : > { %741 = vrot.lane.b32.xlu1 %v725_v4, %s2319_s18  ;;  %324 = vst.msk [vmem:[#allocation2 + $0xd8] sm:$0x1] %vm314_vm2, %v2317_v0  ;;  %v515_v36 = vmul.f32 0.01, %v451_v28  ;;  %v550_v37 = vsel %vm486_vm4, %v454_v21, %v518_v29  ;;  %vm483_vm7 = vcmp.ge.f32.partialorder %v451_v28, 0.0  ;;  %v551_v39 = vsel %vm487_vm5, %v455_v23, %v519_v31  ;;  %v391_v2 = vld [vmem:[%s2436_s23 + $0x60] sm:$0xff] }
  0x21   : > { %325 = vst.msk [vmem:[#allocation2 + $0xf0] sm:$0x1] %vm314_vm2, %v2317_v0  ;;  %v516_v38 = vmul.f32 0.01, %v452_v30  ;;  %vm484_vm8 = vcmp.ge.f32.partialorder %v452_v30, 0.0  ;;  %v552_v41 = vsel %vm488_vm6, %v456_v25, %v520_v33  ;;  %vm489_vm9 = vcmp.ge.f32.partialorder %v457_v32, 0.0 }
  0x22   : > { %326 = vst.msk [vmem:[#allocation2 + $0x108] sm:$0x1] %vm314_vm2, %v2317_v0  ;;  %v521_v40 = vmul.f32 0.01, %v457_v32  ;;  %v522_v42 = vmul.f32 0.01, %v458_v34  ;;  %v547_v43 = vsel %vm483_vm7, %v451_v28, %v515_v36  ;;  %v462_v52 = vadd.f32 %v2456_v10, %v426_v48 }
  0x23   : > { %327 = vst.msk [vmem:[#allocation2 + $0x120] sm:$0x1] %vm314_vm2, %v2317_v0  ;;  %vm490_vm10 = vcmp.ge.f32.partialorder %v458_v34, 0.0  ;;  %v548_v46 = vsel %vm484_vm8, %v452_v30, %v516_v38  ;;  %v525_v53 = vmul.f32 0.01, %v461_v51  ;;  %vm493_vm11 = vcmp.ge.f32.partialorder %v461_v51, 0.0 }
  0x24   : > { %328 = vst.msk [vmem:[#allocation2 + $0x138] sm:$0x1] %vm314_vm2, %v2317_v0  ;;  %v553_v49 = vsel %vm489_vm9, %v457_v32, %v521_v40  ;;  %v554_v50 = vsel %vm490_vm10, %v458_v34, %v522_v42  ;;  %v526_v54 = vmul.f32 0.01, %v462_v52  ;;  %vm494_vm12 = vcmp.ge.f32.partialorder %v462_v52, 0.0  ;;  %v392_v3 = vld [vmem:[%s2436_s23 + $0x68] sm:$0xff] }
  0x25   : > { %329 = vst.msk [vmem:[#allocation2 + $0x150] sm:$0x1] %vm314_vm2, %v2317_v0  ;;  %v557_v57 = vsel %vm493_vm11, %v461_v51, %v525_v53  ;;  %v423_v63 = vmul.f32 %v2441_v5, %v387_v61  ;;  %v424_v1 = vmul.f32 %v2441_v5, %v388_v62  ;;  %v427_v11 = vmul.f32 %v2441_v5, %v391_v2  ;;  %v393_v33 = vld [vmem:[%s2436_s23 + $0x70] sm:$0xff]  ;;  %v394_v34 = vld [vmem:[%s2436_s23 + $0x78] sm:$0xff] }
  0x26   : > { %330 = vst.msk [vmem:[#allocation2 + $0x168] sm:$0x1] %vm314_vm2, %v2317_v0  ;;  %v558_v58 = vsel %vm494_vm12, %v462_v52, %v526_v54  ;;  %v428_v12 = vmul.f32 %v2441_v5, %v392_v3  ;;  %v430_v36 = vmul.f32 %v2441_v5, %v394_v34  ;;  %vm635_vm12 = vcmask 27648  }
  0x27   : > { %331 = vst.msk [vmem:[#allocation2 + $0x180] sm:$0x1] %vm314_vm2, %v2317_v0  ;;  %v459_v8 = vadd.f32 %v2456_v10, %v423_v63  ;;  %v460_v9 = vadd.f32 %v2456_v10, %v424_v1  ;;  %v463_v14 = vadd.f32 %v2456_v10, %v427_v11  ;;  %v396_v11 = vld [vmem:[%s2436_s23 + $0x88] sm:$0xff] }
  0x28   : > { %582 = vst.msk [vmem:[#allocation2 + $0x31] sm:$0xff] %vm305_vm0, %v549_v35  ;;  %v464_v15 = vadd.f32 %v2456_v10, %v428_v12  ;;  %v429_v35 = vmul.f32 %v2441_v5, %v393_v33 }
  0x29   : > { %583 = vst.msk [vmem:[#allocation2 + $0x39] sm:$0xff] %vm305_vm0, %v550_v37  ;;  %vm491_vm13 = vcmp.ge.f32.partialorder %v459_v8, 0.0  ;;  %vm492_vm14 = vcmp.ge.f32.partialorder %v460_v9, 0.0  ;;  %v523_v19 = vmul.f32 0.01, %v459_v8  ;;  %vm495_vm15 = vcmp.ge.f32.partialorder %v463_v14, 0.0 }
  0x2a   : > { %584 = vst.msk [vmem:[#allocation2 + $0x49] sm:$0xff] %vm305_vm0, %v551_v39  ;;  %v524_v20 = vmul.f32 0.01, %v460_v9  ;;  %vm496_vm1 = vcmp.ge.f32.partialorder %v464_v15, 0.0  ;;  %v527_v22 = vmul.f32 0.01, %v463_v14  ;;  %v465_v40 = vadd.f32 %v2456_v10, %v429_v35 }
  0x2b   : > { %585 = vst.msk [vmem:[#allocation2 + $0x51] sm:$0xff] %vm305_vm0, %v552_v41  ;;  %v555_v21 = vsel %vm491_vm13, %v459_v8, %v523_v19  ;;  %v528_v23 = vmul.f32 0.01, %v464_v15  ;;  %v466_v41 = vadd.f32 %v2456_v10, %v430_v36  ;;  %vm700_vm13 = vcmask 60448  }
  0x2c   : > { %580 = vst.msk [vmem:[#allocation2 + $0x19] sm:$0xff] %vm305_vm0, %v547_v43  ;;  %v556_v25 = vsel %vm492_vm14, %v460_v9, %v524_v20  ;;  %v559_v28 = vsel %vm495_vm15, %v463_v14, %v527_v22  ;;  %v529_v42 = vmul.f32 0.01, %v465_v40  ;;  %vm497_vm2 = vcmp.ge.f32.partialorder %v465_v40, 0.0  ;;  %v395_v9 = vld [vmem:[%s2436_s23 + $0x80] sm:$0xff] }
  0x2d   : > { %581 = vst.msk [vmem:[#allocation2 + $0x21] sm:$0xff] %vm305_vm0, %v548_v46  ;;  %v560_v29 = vsel %vm496_vm1, %v464_v15, %v528_v23  ;;  %v530_v43 = vmul.f32 0.01, %v466_v41  ;;  %vm498_vm3 = vcmp.ge.f32.partialorder %v466_v41, 0.0  ;;  %v431_v12 = vmul.f32 %v2441_v5, %v395_v9  ;;  %v399_v14 = vld [vmem:[%s2436_s23 + $0xa0] sm:$0xff]  ;;  %v400_v15 = vld [vmem:[%s2436_s23 + $0xa8] sm:$0xff] }
  0x2e   : > { %586 = vst.msk [vmem:[#allocation2 + $0x61] sm:$0xff] %vm305_vm0, %v553_v49  ;;  %v561_v47 = vsel %vm497_vm2, %v465_v40, %v529_v42  ;;  %v435_v19 = vmul.f32 %v2441_v5, %v399_v14  ;;  %v436_v20 = vmul.f32 %v2441_v5, %v400_v15  ;;  %v401_v42 = vld [vmem:[%s2436_s23 + $0xb0] sm:$0xff]  ;;  %vm765_vm14 = vcmask 93248   ;;  %v406_v15 = vld [vmem:[%s2436_s23 + $0xd8] sm:$0xff] }
  0x2f   : > { %587 = vst.msk [vmem:[#allocation2 + $0x69] sm:$0xff] %vm305_vm0, %v554_v50  ;;  %v562_v48 = vsel %vm498_vm3, %v466_v41, %v530_v43  ;;  %v402_v43 = vld [vmem:[%s2436_s23 + $0xb8] sm:$0xff]  ;;  %vm829_vm2 = vcmask 126048  }
  0x30   : > { %v712_v55 = vld [vmem:[#allocation2 + $0x32] ss:$2 sm:$0xff]  ;;  %v647_v56 = vld [vmem:[#allocation2 + $0x31] ss:$2 sm:$0xff]  ;;  %590 = vst.msk [vmem:[#allocation2 + $0x91] sm:$0xff] %vm305_vm0, %v557_v57  ;;  %v471_v23 = vadd.f32 %v2456_v10, %v435_v19 }
  0x31   : > { %v726_v59 = vpack.c.bf16 %v712_v55, %v712_v55  ;;  %v661_v60 = vpack.c.bf16 %v647_v56, %v647_v56  ;;  %591 = vst.msk [vmem:[#allocation2 + $0x99] sm:$0xff] %vm305_vm0, %v558_v58  ;;  %v969_v26 = vld [vmem:[#allocation2 + $0x30] ss:$2 sm:$0xff]  ;;  %v1034_v39 = vld [vmem:[#allocation2 + $0x31] ss:$2 sm:$0xff] }
  0x32   : > { %v841_v4 = vld [vmem:[#allocation2 + $0x49] ss:$2 sm:$0xff]  ;;  %v776_v18 = vld [vmem:[#allocation2 + $0x48] ss:$2 sm:$0xff]  ;;  %588 = vst.msk [vmem:[#allocation2 + $0x79] sm:$0xff] %vm305_vm0, %v555_v21  ;;  %v984_v30 = vpack.c.bf16 %v969_v26, %v969_v26  ;;  %v1049_v45 = vpack.c.bf16 %v1034_v39, %v1034_v39  ;;  %v398_v56 = vld [vmem:[%s2436_s23 + $0x98] sm:$0xff]  ;;  %v467_v21 = vadd.f32 %v2456_v10, %v431_v12 }
  0x33   : > { %743 = vrot.lane.b32.xlu1 %v726_v59, %s2319_s18  ;;  %678 = vrot.lane.b32.xlu0 %v661_v60, %s2318_s17  ;;  %v855_v16 = vpack.c.bf16 %v841_v4, %v841_v4  ;;  %v790_v24 = vpack.c.bf16 %v776_v18, %v776_v18  ;;  %v906_v27 = vld [vmem:[#allocation2 + $0x4a] ss:$2 sm:$0xff]  ;;  %589 = vst.msk [vmem:[#allocation2 + $0x81] sm:$0xff] %vm305_vm0, %v556_v25  ;;  %vm503_vm8 = vcmp.ge.f32.partialorder %v471_v23, 0.0 }
  0x34   : > { %v839_v6 = vld [vmem:[#allocation2 + $0x19] ss:$2 sm:$0xff]  ;;  %v774_v7 = vld [vmem:[#allocation2 + $0x18] ss:$2 sm:$0xff]  ;;  %592 = vst.msk [vmem:[#allocation2 + $0xa9] sm:$0xff] %vm305_vm0, %v559_v28  ;;  %v920_v31 = vpack.c.bf16 %v906_v27, %v906_v27  ;;  %v397_v55 = vld [vmem:[%s2436_s23 + $0x90] sm:$0xff]  ;;  %v434_v60 = vmul.f32 %v2441_v5, %v398_v56 }
  0x35   : > { %v789_v13 = vpack.c.bf16 %v774_v7, %v774_v7  ;;  %v854_v17 = vpack.c.bf16 %v839_v6, %v839_v6  ;;  %593 = vst.msk [vmem:[#allocation2 + $0xb1] sm:$0xff] %vm305_vm0, %v560_v29  ;;  %v904_v32 = vld [vmem:[#allocation2 + $0x1a] ss:$2 sm:$0xff]  ;;  %v433_v57 = vmul.f32 %v2441_v5, %v397_v55  ;;  %v531_v27 = vmul.f32 0.01, %v467_v21 }
  0x36   : > { %v919_v37 = vpack.c.bf16 %v904_v32, %v904_v32  ;;  %v1036_v38 = vld [vmem:[#allocation2 + $0x61] ss:$2 sm:$0xff]  ;;  %v971_v46 = vld [vmem:[#allocation2 + $0x60] ss:$2 sm:$0xff]  ;;  %594 = vst.msk [vmem:[#allocation2 + $0xc1] sm:$0xff] %vm305_vm0, %v561_v47  ;;  %v470_v63 = vadd.f32 %v2456_v10, %v434_v60  ;;  %vm499_vm6 = vcmp.ge.f32.partialorder %v467_v21, 0.0 }
  0x37   : > { %805 = vrot.lane.b32.xlu2 %v789_v13, %s2320_s12  ;;  %v1050_v44 = vpack.c.bf16 %v1036_v38, %v1036_v38  ;;  %595 = vst.msk [vmem:[#allocation2 + $0xc9] sm:$0xff] %vm305_vm0, %v562_v48  ;;  %v985_v49 = vpack.c.bf16 %v971_v46, %v971_v46  ;;  %v649_v50 = vld [vmem:[#allocation2 + $0x61] ss:$2 sm:$0xff]  ;;  %v1101_v51 = vld [vmem:[#allocation2 + $0x62] ss:$2 sm:$0xff]  ;;  %v469_v62 = vadd.f32 %v2456_v10, %v433_v57 }
  0x38   : > { %v662_v52 = vpack.c.bf16 %v649_v50, %v649_v50  ;;  %v1115_v53 = vpack.c.bf16 %v1101_v51, %v1101_v51  ;;  %v1099_v54 = vld [vmem:[#allocation2 + $0x32] ss:$2 sm:$0xff]  ;;  %v714_v58 = vld [vmem:[#allocation2 + $0x62] ss:$2 sm:$0xff]  ;;  %vm502_vm5 = vcmp.ge.f32.partialorder %v470_v63, 0.0  ;;  %v432_v13 = vmul.f32 %v2441_v5, %v396_v11 }
  0x39   : > { %v1114_v59 = vpack.c.bf16 %v1099_v54, %v1099_v54  ;;  %v716_v61 = vld [vmem:[#allocation2 + $0x92] ss:$2 sm:$0xff]  ;;  %v727_v1 = vpack.c.bf16 %v714_v58, %v714_v58  ;;  %v533_v2 = vmul.f32 0.01, %v469_v62  ;;  %vm501_vm4 = vcmp.ge.f32.partialorder %v469_v62, 0.0 }
  0x3a   : > { %v728_v3 = vpack.c.bf16 %v716_v61, %v716_v61  ;;  %v534_v4 = vmul.f32 0.01, %v470_v63  ;;  %v651_v6 = vld [vmem:[#allocation2 + $0x91] ss:$2 sm:$0xff]  ;;  %v468_v22 = vadd.f32 %v2456_v10, %v432_v13  ;;  %v535_v29 = vmul.f32 0.01, %v471_v23 }
  0x3b   : > { %872 = vrot.lane.b32.xlu1 %v855_v16, %s2321_s13  ;;  %870 = vrot.lane.b32.xlu0 %v854_v17, %s2321_s13  ;;  %v565_v7 = vsel %vm501_vm4, %v469_v62, %v533_v2  ;;  %v843_v16 = vld [vmem:[#allocation2 + $0x79] ss:$2 sm:$0xff]  ;;  %v663_v18 = vpack.c.bf16 %v651_v6, %v651_v6  ;;  %v563_v32 = vsel %vm499_vm6, %v467_v21, %v531_v27  ;;  %v908_v38 = vld [vmem:[#allocation2 + $0x7a] ss:$2 sm:$0xff]  ;;  %v405_v13 = vld [vmem:[%s2436_s23 + $0xd0] sm:$0xff] }
  0x3c   : > { %v566_v8 = vsel %vm502_vm5, %v470_v63, %v534_v4  ;;  %598 = vst.msk [vmem:[#allocation2 + $0xf1] sm:$0xff] %vm305_vm0, %v565_v7  ;;  %v780_v17 = vld [vmem:[#allocation2 + $0xa8] ss:$2 sm:$0xff]  ;;  %v856_v25 = vpack.c.bf16 %v843_v16, %v843_v16  ;;  %v532_v28 = vmul.f32 0.01, %v468_v22  ;;  %vm500_vm7 = vcmp.ge.f32.partialorder %v468_v22, 0.0 }
  0x3d   : > { %599 = vst.msk [vmem:[#allocation2 + $0xf9] sm:$0xff] %vm305_vm0, %v566_v8  ;;  %v792_v26 = vpack.c.bf16 %v780_v17, %v780_v17  ;;  %v567_v34 = vsel %vm503_vm8, %v471_v23, %v535_v29  ;;  %v921_v40 = vpack.c.bf16 %v908_v38, %v908_v38  ;;  %v845_v41 = vld [vmem:[#allocation2 + $0xa9] ss:$2 sm:$0xff]  ;;  %v438_v46 = vmul.f32 %v2441_v5, %v402_v43  ;;  %v973_v55 = vld [vmem:[#allocation2 + $0x90] ss:$2 sm:$0xff] }
  0x3e   : > { %v564_v33 = vsel %vm500_vm7, %v468_v22, %v532_v28  ;;  %596 = vst.msk [vmem:[#allocation2 + $0xd9] sm:$0xff] %vm305_vm0, %v563_v32  ;;  %v1038_v47 = vld [vmem:[#allocation2 + $0x91] ss:$2 sm:$0xff]  ;;  %v975_v48 = vld [vmem:[#allocation2 + $0xc0] ss:$2 sm:$0xff]  ;;  %v986_v58 = vpack.c.bf16 %v973_v55, %v973_v55  ;;  %v441_v16 = vmul.f32 %v2441_v5, %v405_v13  ;;  %vm1224_vm7 = vcmask 1041408  }
  0x3f   : > { %807 = vrot.lane.b32.xlu2 %v790_v24, %s2320_s12  ;;  %v472_v24 = vadd.f32 %v2456_v10, %v436_v20  ;;  %597 = vst.msk [vmem:[#allocation2 + $0xe1] sm:$0xff] %vm305_vm0, %v564_v33  ;;  %v474_v50 = vadd.f32 %v2456_v10, %v438_v46  ;;  %v1051_v51 = vpack.c.bf16 %v1038_v47, %v1038_v47  ;;  %v1103_v60 = vld [vmem:[#allocation2 + $0x92] ss:$2 sm:$0xff]  ;;  %v1040_v63 = vld [vmem:[#allocation2 + $0xc1] ss:$2 sm:$0xff] }
  0x40   : > { %600 = vst.msk [vmem:[#allocation2 + $0x109] sm:$0xff] %vm305_vm0, %v567_v34  ;;  %v1116_v62 = vpack.c.bf16 %v1103_v60, %v1103_v60  ;;  %v1052_v2 = vpack.c.bf16 %v1040_v63, %v1040_v63  ;;  %v718_v7 = vld [vmem:[#allocation2 + $0xc2] ss:$2 sm:$0xff]  ;;  %v653_v12 = vld [vmem:[#allocation2 + $0xc1] ss:$2 sm:$0xff]  ;;  %v442_v20 = vmul.f32 %v2441_v5, %v406_v15  ;;  %v477_v22 = vadd.f32 %v2456_v10, %v441_v16 }
  0x41   : > { %vm504_vm9 = vcmp.ge.f32.partialorder %v472_v24, 0.0  ;;  %v538_v54 = vmul.f32 0.01, %v474_v50  ;;  %vm506_vm11 = vcmp.ge.f32.partialorder %v474_v50, 0.0  ;;  %v729_v11 = vpack.c.bf16 %v718_v7, %v718_v7  ;;  %v614_v14 = vld [vmem:[#allocation2 + $0x30] ss:$2 sm:$0xff] }
  0x42   : > { %v628_v19 = vpack.c.bf16 %v614_v14, %v614_v14  ;;  %v478_v23 = vadd.f32 %v2456_v10, %v442_v20  ;;  %vm509_vm15 = vcmp.ge.f32.partialorder %v477_v22, 0.0  ;;  %v404_v32 = vld [vmem:[%s2436_s23 + $0xc8] sm:$0xff]  ;;  %v409_v13 = vld [vmem:[%s2436_s23 + $0xf0] sm:$0xff]  ;;  %v410_v14 = vld [vmem:[%s2436_s23 + $0xf8] sm:$0xff] }
  0x43   : > { %1000 = vrot.lane.b32.xlu1 %v984_v30, %s2322_s19  ;;  %937 = vrot.lane.b32.xlu0 %v920_v31, %s2323_s20  ;;  %v536_v30 = vmul.f32 0.01, %v472_v24  ;;  %v778_v31 = vld [vmem:[#allocation2 + $0x78] ss:$2 sm:$0xff]  ;;  %v570_v57 = vsel %vm506_vm11, %v474_v50, %v538_v54  ;;  %v440_v34 = vmul.f32 %v2441_v5, %v404_v32  ;;  %v445_v16 = vmul.f32 %v2441_v5, %v409_v13  ;;  %v2181_v32 = vld [vmem:[%s3069_s1 + $0x8] sm:$0xff] }
  0x44   : > { %v791_v36 = vpack.c.bf16 %v778_v31, %v778_v31  ;;  %603 = vst.msk [vmem:[#allocation2 + $0x129] sm:$0xff] %vm305_vm0, %v570_v57  ;;  %v655_v6 = vld [vmem:[#allocation2 + $0xf1] ss:$2 sm:$0xff]  ;;  %vm510_vm1 = vcmp.ge.f32.partialorder %v478_v23, 0.0  ;;  %v542_v27 = vmul.f32 0.01, %v478_v23 }
  0x45   : > { %v568_v35 = vsel %vm504_vm9, %v472_v24, %v536_v30  ;;  %v665_v9 = vpack.c.bf16 %v655_v6, %v655_v6  ;;  %637 = vst.msk [vmem:[#allocation4 + $0x4] sm:$0xf] %vm635_vm12, %v628_v19  ;;  %v720_v28 = vld [vmem:[#allocation2 + $0xf2] ss:$2 sm:$0xff]  ;;  %vm959_vm11 = vcmask 191648  }
  0x46   : > { %601 = vst.msk [vmem:[#allocation2 + $0x111] sm:$0xff] %vm305_vm0, %v568_v35  ;;  %v782_v17 = vld [vmem:[#allocation2 + $0xd8] ss:$2 sm:$0xff]  ;;  %v574_v30 = vsel %vm510_vm1, %v478_v23, %v542_v27  ;;  %v481_v23 = vadd.f32 %v2456_v10, %v445_v16  ;;  %vm1089_vm1 = vcmask 257248  }
  0x47   : > { %935 = vrot.lane.b32.xlu2 %v919_v37, %s2323_s20  ;;  %v910_v37 = vld [vmem:[#allocation2 + $0xaa] ss:$2 sm:$0xff]  ;;  %v793_v24 = vpack.c.bf16 %v782_v17, %v782_v17  ;;  %v403_v31 = vld [vmem:[%s2436_s23 + $0xc0] sm:$0xff]  ;;  %607 = vst.msk [vmem:[#allocation2 + $0x159] sm:$0xff] %vm305_vm0, %v574_v30  ;;  %v446_v17 = vmul.f32 %v2441_v5, %v410_v14 }
  0x48   : > { %v922_v39 = vpack.c.bf16 %v910_v37, %v910_v37  ;;  %v439_v33 = vmul.f32 %v2441_v5, %v403_v31  ;;  %v912_v37 = vld [vmem:[#allocation2 + $0xda] ss:$2 sm:$0xff]  ;;  %vm513_vm8 = vcmp.ge.f32.partialorder %v481_v23, 0.0 }
  0x49   : > { %v923_v43 = vpack.c.bf16 %v912_v37, %v912_v37  ;;  %v616_v19 = vld [vmem:[#allocation2 + $0x60] ss:$2 sm:$0xff]  ;;  %v618_v31 = vld [vmem:[#allocation2 + $0x90] ss:$2 sm:$0xff] }
  0x4a   : > { %v475_v38 = vadd.f32 %v2456_v10, %v439_v33  ;;  %v629_v27 = vpack.c.bf16 %v616_v19, %v616_v19  ;;  %v630_v33 = vpack.c.bf16 %v618_v31, %v618_v31  ;;  %v620_v19 = vld [vmem:[#allocation2 + $0xc0] ss:$2 sm:$0xff] }
  0x4b   : > { %1067 = vrot.lane.b32.xlu1 %v1050_v44, %s2324_s21  ;;  %1065 = vrot.lane.b32.xlu0 %v1049_v45, %s2324_s21  ;;  %v857_v44 = vpack.c.bf16 %v845_v41, %v845_v41  ;;  %v437_v45 = vmul.f32 %v2441_v5, %v401_v42 }
  0x4c   : > { %v539_v41 = vmul.f32 0.01, %v475_v38  ;;  %vm507_vm3 = vcmp.ge.f32.partialorder %v475_v38, 0.0  ;;  %638 = vst.msk [vmem:[#allocation4 + $0x8] sm:$0xf] %vm635_vm12, %v629_v27 }
  0x4d   : > { %v784_v21 = vld [vmem:[#allocation2 + $0x108] ss:$2 sm:$0xff]  ;;  %v849_v35 = vld [vmem:[#allocation2 + $0x109] ss:$2 sm:$0xff]  ;;  %639 = vst.msk [vmem:[#allocation4 + $0xc] sm:$0xf] %vm635_vm12, %v630_v33 }
  0x4f   : > { %1002 = vrot.lane.b32.xlu2 %v985_v49, %s2322_s19  ;;  %v473_v49 = vadd.f32 %v2456_v10, %v437_v45  ;;  %v571_v45 = vsel %vm507_vm3, %v475_v38, %v539_v41  ;;  %v2180_v38 = vld [vmem:[%s3069_s1] sm:$0xff]  ;;  %vm1154_vm3 = vcmask 290048  }
  0x50   : > { %604 = vst.msk [vmem:[#allocation2 + $0x139] sm:$0xff] %vm305_vm0, %v571_v45 }
  0x51   : > { %vm505_vm10 = vcmp.ge.f32.partialorder %v473_v49, 0.0 }
  0x53   : > { %680 = vrot.lane.b32.xlu1 %v662_v52, %s2318_s17  ;;  %1132 = vrot.lane.b32.xlu0 %v1115_v53, %s2325_s22  ;;  %v987_v52 = vpack.c.bf16 %v975_v48, %v975_v48  ;;  %v537_v53 = vmul.f32 0.01, %v473_v49  ;;  %v407_v48 = vld [vmem:[%s2436_s23 + $0xe0] sm:$0xff] }
  0x54   : > { %v443_v50 = vmul.f32 %v2441_v5, %v407_v48 }
  0x55   : > { %v569_v56 = vsel %vm505_vm10, %v473_v49, %v537_v53  ;;  %v408_v49 = vld [vmem:[%s2436_s23 + $0xe8] sm:$0xff]  ;;  %vm894_vm10 = vcmask 158848  }
  0x56   : > { %602 = vst.msk [vmem:[#allocation2 + $0x121] sm:$0xff] %vm305_vm0, %v569_v56  ;;  %v444_v53 = vmul.f32 %v2441_v5, %v408_v49  ;;  %v479_v55 = vadd.f32 %v2456_v10, %v443_v50  ;;  %v545_v5 = vmul.f32 0.01, %v481_v23 }
  0x57   : > { %1130 = vrot.lane.b32.xlu2 %v1114_v59, %s2325_s22  ;;  %v1105_v59 = vld [vmem:[#allocation2 + $0xc2] ss:$2 sm:$0xff] }
  0x58   : > { %v1117_v61 = vpack.c.bf16 %v1105_v59, %v1105_v59  ;;  %v480_v56 = vadd.f32 %v2456_v10, %v444_v53  ;;  %vm511_vm5 = vcmp.ge.f32.partialorder %v479_v55, 0.0 }
  0x5a   : > { %vm512_vm6 = vcmp.ge.f32.partialorder %v480_v56, 0.0  ;;  %v544_v60 = vmul.f32 0.01, %v480_v56 }
  0x5b   : > { %747 = vrot.lane.b32.xlu1 %v728_v3, %s2319_s18  ;;  %745 = vrot.lane.b32.xlu0 %v727_v1, %s2319_s18  ;;  %v612_v1 = vld [vmem:[#allocation2] ss:$2 sm:$0xff] }
  0x5c   : > { %v627_v4 = vpack.c.bf16 %v612_v1, %v612_v1  ;;  %v576_v1 = vsel %vm512_vm6, %v480_v56, %v544_v60  ;;  %vm1330_vm6 = vcmask 60416  }
  0x5d   : > { %v979_v54 = vld [vmem:[#allocation2 + $0x120] ss:$2 sm:$0xff]  ;;  %609 = vst.msk [vmem:[#allocation2 + $0x171] sm:$0xff] %vm305_vm0, %v576_v1  ;;  %v657_v20 = vld [vmem:[#allocation2 + $0x121] ss:$2 sm:$0xff] }
  0x5e   : > { %636 = vst.msk [vmem:[#allocation4] sm:$0xf] %vm635_vm12, %v627_v4  ;;  %v989_v59 = vpack.c.bf16 %v979_v54, %v979_v54  ;;  %v1107_v4 = vld [vmem:[#allocation2 + $0xf2] ss:$2 sm:$0xff]  ;;  %v722_v45 = vld [vmem:[#allocation2 + $0x122] ss:$2 sm:$0xff] }
  0x5f   : > { %682 = vrot.lane.b32.xlu2 %v663_v18, %s2318_s17  ;;  %v664_v18 = vpack.c.bf16 %v653_v12, %v653_v12  ;;  %v1118_v7 = vpack.c.bf16 %v1107_v4, %v1107_v4 }
  0x63   : > { %874 = vrot.lane.b32.xlu1 %v856_v25, %s2321_s13  ;;  %811 = vrot.lane.b32.xlu0 %v792_v26, %s2320_s12  ;;  %v541_v25 = vmul.f32 0.01, %v477_v22  ;;  %v794_v26 = vpack.c.bf16 %v784_v21, %v784_v21 }
  0x65   : > { %v573_v29 = vsel %vm509_vm15, %v477_v22, %v541_v25  ;;  %vm1024_vm15 = vcmask 224448  }
  0x66   : > { %606 = vst.msk [vmem:[#allocation2 + $0x151] sm:$0xff] %vm305_vm0, %v573_v29  ;;  %v666_v29 = vpack.c.bf16 %v657_v20, %v657_v20  ;;  %v622_v20 = vld [vmem:[#allocation2 + $0xf0] ss:$2 sm:$0xff] }
  0x67   : > { %809 = vrot.lane.b32.xlu2 %v791_v36, %s2320_s12  ;;  %v730_v36 = vpack.c.bf16 %v720_v28, %v720_v28 }
  0x6b   : > { %941 = vrot.lane.b32.xlu1 %v922_v39, %s2323_s20  ;;  %939 = vrot.lane.b32.xlu0 %v921_v40, %s2323_s20  ;;  %v476_v39 = vadd.f32 %v2456_v10, %v440_v34  ;;  %v859_v40 = vpack.c.bf16 %v849_v35, %v849_v35  ;;  %v577_v34 = vsel %vm513_vm8, %v481_v23, %v545_v5 }
  0x6c   : > { %610 = vst.msk [vmem:[#allocation2 + $0x181] sm:$0xff] %vm305_vm0, %v577_v34  ;;  %v632_v23 = vpack.c.bf16 %v622_v20, %v622_v20 }
  0x6d   : > { %v540_v42 = vmul.f32 0.01, %v476_v39  ;;  %vm508_vm4 = vcmp.ge.f32.partialorder %v476_v39, 0.0  ;;  %v659_v21 = vld [vmem:[#allocation2 + $0x151] ss:$2 sm:$0xff] }
  0x6e   : > { %v667_v30 = vpack.c.bf16 %v659_v21, %v659_v21  ;;  %v1111_v21 = vld [vmem:[#allocation2 + $0x152] ss:$2 sm:$0xff]  ;;  %641 = vst.msk [vmem:[#allocation4 + $0x14] sm:$0xf] %vm635_vm12, %v632_v23 }
  0x6f   : > { %876 = vrot.lane.b32.xlu2 %v857_v44, %s2321_s13  ;;  %v847_v44 = vld [vmem:[#allocation2 + $0xd9] ss:$2 sm:$0xff]  ;;  %v572_v46 = vsel %vm508_vm4, %v476_v39, %v540_v42  ;;  %v724_v39 = vld [vmem:[#allocation2 + $0x152] ss:$2 sm:$0xff]  ;;  %vm1211_vm4 = vcmask 293888  }
  0x70   : > { %605 = vst.msk [vmem:[#allocation2 + $0x141] sm:$0xff] %vm305_vm0, %v572_v46 }
  0x73   : > { %1069 = vrot.lane.b32.xlu1 %v1051_v51, %s2324_s21  ;;  %1006 = vrot.lane.b32.xlu0 %v987_v52, %s2322_s19  ;;  %v977_v51 = vld [vmem:[#allocation2 + $0xf0] ss:$2 sm:$0xff]  ;;  %v858_v52 = vpack.c.bf16 %v847_v44, %v847_v44 }
  0x74   : > { %v988_v57 = vpack.c.bf16 %v977_v51, %v977_v51 }
  0x77   : > { %1004 = vrot.lane.b32.xlu2 %v986_v58, %s2322_s19  ;;  %v543_v58 = vmul.f32 0.01, %v479_v55  ;;  %v851_v48 = vld [vmem:[#allocation2 + $0x139] ss:$2 sm:$0xff] }
  0x7b   : > { %1136 = vrot.lane.b32.xlu1 %v1117_v61, %s2325_s22  ;;  %1134 = vrot.lane.b32.xlu0 %v1116_v62, %s2325_s22  ;;  %v914_v61 = vld [vmem:[#allocation2 + $0x10a] ss:$2 sm:$0xff]  ;;  %v575_v62 = vsel %vm511_vm5, %v479_v55, %v543_v58  ;;  %vm353_vm5 = vcmask 58368  }
  0x7c   : > { %608 = vst.msk [vmem:[#allocation2 + $0x169] sm:$0xff] %vm305_vm0, %v575_v62  ;;  %v981_v58 = vld [vmem:[#allocation2 + $0x150] ss:$2 sm:$0xff] }
  0x7d   : > { %v990_v62 = vpack.c.bf16 %v981_v58, %v981_v58  ;;  %354 = vst.msk [vmem:[#allocation3 + $0x8] sm:$0x3] %vm353_vm5, %v2317_v0 }
  0x7e   : > { %357 = vst.msk [vmem:[#allocation3 + $0x98] sm:$0x3] %vm353_vm5, %v2317_v0 }
  0x7f   : > { %1071 = vrot.lane.b32.xlu2 %v1052_v2, %s2324_s21  ;;  %v924_v2 = vpack.c.bf16 %v914_v61, %v914_v61 }
  0x83   : > { %686 = vrot.lane.b32.xlu0 %v665_v9, %s2318_s17  ;;  %749 = vrot.lane.b32.xlu1 %v729_v11, %s2319_s18  ;;  %v1042_v9 = vld [vmem:[#allocation2 + $0xf1] ss:$2 sm:$0xff]  ;;  %v788_v54 = vld [vmem:[#allocation2 + $0x168] ss:$2 sm:$0xff] }
  0x84   : > { %v853_v49 = vld [vmem:[#allocation2 + $0x169] ss:$2 sm:$0xff]  ;;  %v796_v56 = vpack.c.bf16 %v788_v54, %v788_v54 }
  0x85   : > { %v861_v53 = vpack.c.bf16 %v853_v49, %v853_v49 }
  0x87   : > { %684 = vrot.lane.b32.xlu2 %v664_v18, %s2318_s17  ;;  %v1053_v18 = vpack.c.bf16 %v1042_v9, %v1042_v9 }
  0x8b   : > { %813 = vrot.lane.b32.xlu0 %v793_v24, %s2320_s12  ;;  %815 = vrot.lane.b32.xlu1 %v794_v26, %s2320_s12  ;;  %v482_v24 = vadd.f32 %v2456_v10, %v446_v17  ;;  %v1109_v10 = vld [vmem:[#allocation2 + $0x122] ss:$2 sm:$0xff] }
  0x8c   : > { %v1119_v37 = vpack.c.bf16 %v1109_v10, %v1109_v10 }
  0x8d   : > { %v546_v28 = vmul.f32 0.01, %v482_v24  ;;  %vm514_vm9 = vcmp.ge.f32.partialorder %v482_v24, 0.0 }
  0x8f   : > { %751 = vrot.lane.b32.xlu2 %v730_v36, %s2319_s18  ;;  %v578_v36 = vsel %vm514_vm9, %v482_v24, %v546_v28 }
  0x90   : > { %611 = vst.msk [vmem:[#allocation2 + $0x189] sm:$0xff] %vm305_vm0, %v578_v36 }
  0x91   : > { %v677_v3 = vpop.permute.xlu0 %676  ;;  %v806_v47 = vpop.permute.xlu2 %805 }
  0x92   : > { %v742_v8 = vpop.permute.xlu1 %741  ;;  %701 = vst.msk [vmem:[#allocation4] sm:$0xf] %vm700_vm13, %v677_v3  ;;  %v1044_v3 = vld [vmem:[#allocation2 + $0x121] ss:$2 sm:$0xff] }
  0x93   : > { %766 = vst.msk [vmem:[#allocation4] sm:$0xf] %vm765_vm14, %v742_v8  ;;  %880 = vrot.lane.b32.xlu0 %v859_v40, %s2321_s13  ;;  %943 = vrot.lane.b32.xlu1 %v923_v43, %s2323_s20  ;;  %v1054_v6 = vpack.c.bf16 %v1044_v3, %v1044_v3  ;;  %v1175_v8 = vld [vmem:[%s3069_s1 + $0x10] sm:$0x3]  ;;  %v786_v40 = vld [vmem:[#allocation2 + $0x138] ss:$2 sm:$0xff]  ;;  %v732_v43 = vpack.c.bf16 %v724_v39, %v724_v39 }
  0x94   : > { %830 = vst.msk [vmem:[#allocation4] sm:$0xf] %vm829_vm2, %v806_v47  ;;  %v1205_v11 = vunpack.c.l.b16 %v1175_v8  ;;  %v795_v44 = vpack.c.bf16 %v786_v40, %v786_v40  ;;  %v731_v47 = vpack.c.bf16 %v722_v45, %v722_v45  ;;  %v1046_v3 = vld [vmem:[#allocation2 + $0x151] ss:$2 sm:$0xff]  ;;  %v624_v39 = vld [vmem:[#allocation2 + $0x120] ss:$2 sm:$0xff] }
  0x95   : > { %v1055_v8 = vpack.c.bf16 %v1046_v3, %v1046_v3 }
  0x96   : > { %v1208_v15 = vpack.c.b16 %v1205_v11, %v1205_v11 }
  0x97   : > { %878 = vrot.lane.b32.xlu2 %v858_v52, %s2321_s13  ;;  %v860_v52 = vpack.c.bf16 %v851_v48, %v851_v48  ;;  %v1048_v4 = vld [vmem:[#allocation2 + $0x181] ss:$2 sm:$0xff]  ;;  %v983_v11 = vld [vmem:[#allocation2 + $0x180] ss:$2 sm:$0xff] }
  0x98   : > { %v1226_v22 = vsel %vm1224_vm7, %v1208_v15, 0  ;;  %v1056_v9 = vpack.c.bf16 %v1048_v4, %v1048_v4  ;;  %v991_v13 = vpack.c.bf16 %v983_v11, %v983_v11  ;;  %v1113_v14 = vld [vmem:[#allocation2 + $0x182] ss:$2 sm:$0xff] }
  0x99   : > { %v808_v63 = vpop.permute.xlu2 %807  ;;  %1233 = vmatpush.bf16.msra.mxu0 %v1226_v22  ;;  %v631_v22 = vpack.c.bf16 %v620_v19, %v620_v19  ;;  %v2815_v19 = vld [vmem:[%s3074_s6] ss:$0 sm:$0xff] }
  0x9b   : > { %1008 = vrot.lane.b32.xlu0 %v988_v57, %s2322_s19  ;;  %1010 = vrot.lane.b32.xlu1 %v989_v59, %s2322_s19  ;;  %v918_v57 = vld [vmem:[#allocation2 + $0x16a] ss:$2 sm:$0xff]  ;;  %640 = vst.msk [vmem:[#allocation4 + $0x10] sm:$0xf] %vm635_vm12, %v631_v22 }
  0x9c   : > { %v926_v61 = vpack.c.bf16 %v918_v57, %v918_v57 }
  0x9d   : > { %1234 = vmatpush.bf16.msra.mxu0 %v2181_v32 }
  0x9f   : > { %945 = vrot.lane.b32.xlu2 %v924_v2, %s2323_s20 }
  0xa1   : > { %v936_v12 = vpop.permute.xlu2 %935  ;;  %1235 = vmatpush.bf16.msra.mxu0 %v2180_v38 }
  0xa3   : > { %1075 = vrot.lane.b32.xlu0 %v1054_v6, %s2324_s21  ;;  %1138 = vrot.lane.b32.xlu1 %v1118_v7, %s2325_s22 }
  0xa5   : > { %v744_v25 = vpop.permute.xlu1 %743  ;;  %v679_v26 = vpop.permute.xlu0 %678 }
  0xa6   : > { %702 = vst.msk [vmem:[#allocation4 + $0x4] sm:$0xf] %vm700_vm13, %v679_v26 }
  0xa7   : > { %767 = vst.msk [vmem:[#allocation4 + $0x4] sm:$0xf] %vm765_vm14, %v744_v25  ;;  %1073 = vrot.lane.b32.xlu2 %v1053_v18, %s2324_s21  ;;  %v1121_v18 = vpack.c.bf16 %v1113_v14, %v1113_v14  ;;  %v1120_v25 = vpack.c.bf16 %v1111_v21, %v1111_v21 }
  0xa8   : > { %831 = vst.msk [vmem:[#allocation4 + $0x4] sm:$0xf] %vm829_vm2, %v808_v63  ;;  %v916_v63 = vld [vmem:[#allocation2 + $0x13a] ss:$2 sm:$0xff] }
  0xa9   : > { %v1003_v35 = vpop.permute.xlu2 %1002  ;;  %v925_v2 = vpack.c.bf16 %v916_v63, %v916_v63 }
  0xab   : > { %688 = vrot.lane.b32.xlu0 %v666_v29, %s2318_s17  ;;  %690 = vrot.lane.b32.xlu1 %v667_v30, %s2318_s17  ;;  %s2326_s17 = smov 56  }
  0xad   : > { %v873_v41 = vpop.permute.xlu1 %872  ;;  %v871_v42 = vpop.permute.xlu0 %870 }
  0xae   : > { %896 = vst.msk [vmem:[#allocation4 + $0x4] sm:$0xf] %vm894_vm10, %v873_v41  ;;  %v633_v41 = vpack.c.bf16 %v624_v39, %v624_v39 }
  0xaf   : > { %895 = vst.msk [vmem:[#allocation4] sm:$0xf] %vm894_vm10, %v871_v42  ;;  %1140 = vrot.lane.b32.xlu2 %v1119_v37, %s2325_s22 }
  0xb0   : > { %960 = vst.msk [vmem:[#allocation4] sm:$0xf] %vm959_vm11, %v936_v12 }
  0xb1   : > { %v1131_v46 = vpop.permute.xlu2 %1130  ;;  %642 = vst.msk [vmem:[#allocation4 + $0x18] sm:$0xf] %vm635_vm12, %v633_v41 }
  0xb3   : > { %755 = vrot.lane.b32.xlu0 %v732_v43, %s2319_s18  ;;  %817 = vrot.lane.b32.xlu1 %v795_v44, %s2320_s12  ;;  %v626_v44 = vld [vmem:[#allocation2 + $0x150] ss:$2 sm:$0xff] }
  0xb5   : > { %v1001_v50 = vpop.permute.xlu1 %1000  ;;  %v938_v51 = vpop.permute.xlu0 %937 }
  0xb6   : > { %1025 = vst.msk [vmem:[#allocation4] sm:$0xf] %vm1024_vm15, %v1001_v50 }
  0xb7   : > { %961 = vst.msk [vmem:[#allocation4 + $0x4] sm:$0xf] %vm959_vm11, %v938_v51  ;;  %753 = vrot.lane.b32.xlu2 %v731_v47, %s2319_s18 }
  0xb8   : > { %1026 = vst.msk [vmem:[#allocation4 + $0x4] sm:$0xf] %vm1024_vm15, %v1003_v35 }
  0xb9   : > { %v683_v55 = vpop.permute.xlu2 %682 }
  0xba   : > { %704 = vst.msk [vmem:[#allocation4 + $0xc] sm:$0xf] %vm700_vm13, %v683_v55 }
  0xbb   : > { %882 = vrot.lane.b32.xlu0 %v860_v52, %s2321_s13  ;;  %884 = vrot.lane.b32.xlu1 %v861_v53, %s2321_s13 }
  0xbd   : > { %v1068_v59 = vpop.permute.xlu1 %1067  ;;  %v1066_v60 = vpop.permute.xlu0 %1065 }
  0xbe   : > { %1091 = vst.msk [vmem:[#allocation4 + $0x4] sm:$0xf] %vm1089_vm1, %v1068_v59 }
  0xbf   : > { %1090 = vst.msk [vmem:[#allocation4] sm:$0xf] %vm1089_vm1, %v1066_v60  ;;  %819 = vrot.lane.b32.xlu2 %v796_v56, %s2320_s12  ;;  %s2327_s12 = smov 48  }
  0xc0   : > { %1155 = vst.msk [vmem:[#allocation4] sm:$0xf] %vm1154_vm3, %v1131_v46  ;;  %v634_v46 = vpack.c.bf16 %v626_v44, %v626_v44 }
  0xc1   : > { %v810_v1 = vpop.permute.xlu2 %809 }
  0xc2   : > { %643 = vst.msk [vmem:[#allocation4 + $0x1c] sm:$0xf] %vm635_vm12, %v634_v46  ;;  %vm351_vm12 = vcmask 64512  }
  0xc3   : > { %949 = vrot.lane.b32.xlu0 %v926_v61, %s2323_s20  ;;  %1012 = vrot.lane.b32.xlu1 %v990_v62, %s2322_s19  ;;  %352 = vst.msk [vmem:[#allocation3] sm:$0xff] %vm351_vm12, %v2317_v0 }
  0xc4   : > { %356 = vst.msk [vmem:[#allocation3 + $0x90] sm:$0xff] %vm351_vm12, %v2317_v0 }
  0xc5   : > { %v681_v6 = vpop.permute.xlu1 %680  ;;  %v1133_v7 = vpop.permute.xlu0 %1132 }
  0xc6   : > { %703 = vst.msk [vmem:[#allocation4 + $0x8] sm:$0xf] %vm700_vm13, %v681_v6 }
  0xc7   : > { %1156 = vst.msk [vmem:[#allocation4 + $0x4] sm:$0xf] %vm1154_vm3, %v1133_v7  ;;  %947 = vrot.lane.b32.xlu2 %v925_v2, %s2323_s20  ;;  %s1983_s20 = scalar_lea.hbm %s3076_s8, %s2190_s24  ;;  %s2273_s24 = scalar_lea.hbm %s3076_s8, 128 }
  0xc8   : > { %s1986_s25 = sshll.u32 %s1983_s20, 4  ;;  %s1987_s25 = int_to_ptr.hbm [resolvable:$true] %s1986_s25 }
  0xc9   : > { %v877_v12 = vpop.permute.xlu2 %876  ;;  %s2267_s9 = sshra.s32 %s1987_s25, 4  ;;  %s2268_s9 = int_to_ptr.hbm [resolvable:$true] %s2267_s9 }
  0xca   : > { %v1339_v62 = vld [vmem:[#allocation3 + $0x1] sm:$0xff]  ;;  %p2274_p0 = scmp.lt.s32.totalorder %s2268_s9, %s3076_s8 }
  0xcb   : > { %1077 = vrot.lane.b32.xlu0 %v1055_v8, %s2324_s21  ;;  %1079 = vrot.lane.b32.xlu1 %v1056_v9, %s2324_s21  ;;  %v1347_v63 = vpack.c.bf16 %v1339_v62, %v1339_v62  ;;  %v1689_v7 = vld [vmem:[#allocation3 + $0x91] sm:$0xff] }
  0xcc   : > { %v1697_v11 = vpack.c.bf16 %v1689_v7, %v1689_v7 }
  0xcd   : > { %v748_v15 = vpop.permute.xlu1 %747  ;;  %v746_v16 = vpop.permute.xlu0 %745 }
  0xce   : > { %769 = vst.msk [vmem:[#allocation4 + $0xc] sm:$0xf] %vm765_vm14, %v748_v15  ;;  %v2176_v17 = vld [vmem:[#allocation4] sm:$0xff] }
  0xcf   : > { %768 = vst.msk [vmem:[#allocation4 + $0x8] sm:$0xf] %vm765_vm14, %v746_v16  ;;  %1014 = vrot.lane.b32.xlu2 %v991_v13, %s2322_s19  ;;  %2126 = vmatmul.msk.bf16.vlgmr.msra.gmra.mxu0 %vm1211_vm4, %v2176_v17 }
  0xd0   : > { %832 = vst.msk [vmem:[#allocation4 + $0x8] sm:$0xf] %vm829_vm2, %v810_v1 }
  0xd1   : > { %v1005_v24 = vpop.permute.xlu2 %1004 }
  0xd3   : > { %1144 = vrot.lane.b32.xlu0 %v1121_v18, %s2325_s22  ;;  %v2810_v18 = vld [vmem:[%s3073_s5] ss:$0 sm:$0xff] }
  0xd5   : > { %v875_v26 = vpop.permute.xlu1 %874  ;;  %v812_v27 = vpop.permute.xlu0 %811 }
  0xd6   : > { %897 = vst.msk [vmem:[#allocation4 + $0x8] sm:$0xf] %vm894_vm10, %v875_v26 }
  0xd7   : > { %833 = vst.msk [vmem:[#allocation4 + $0xc] sm:$0xf] %vm829_vm2, %v812_v27  ;;  %1142 = vrot.lane.b32.xlu2 %v1120_v25, %s2325_s22 }
  0xd8   : > { %898 = vst.msk [vmem:[#allocation4 + $0xc] sm:$0xf] %vm894_vm10, %v877_v12 }
  0xd9   : > { %v1072_v5 = vpop.permute.xlu2 %1071 }
  0xdb   : > { %1363 = vrot.lane.b32.xlu0 %v1347_v63, %s2319_s18 }
  0xdd   : > { %v942_v28 = vpop.permute.xlu1 %941  ;;  %v940_v29 = vpop.permute.xlu0 %939 }
  0xde   : > { %963 = vst.msk [vmem:[#allocation4 + $0xc] sm:$0xf] %vm959_vm11, %v942_v28 }
  0xdf   : > { %962 = vst.msk [vmem:[#allocation4 + $0x8] sm:$0xf] %vm959_vm11, %v940_v29 }
  0xe0   : > { %1027 = vst.msk [vmem:[#allocation4 + $0x8] sm:$0xf] %vm1024_vm15, %v1005_v24 }
  0xe1   : > { %v685_v30 = vpop.permute.xlu2 %684 }
  0xe2   : > { %705 = vst.msk [vmem:[#allocation4 + $0x10] sm:$0xf] %vm700_vm13, %v685_v30 }
  0xe3   : > { %1720 = vrot.lane.b32.xlu0 %v1697_v11, %s2326_s17 }
  0xe5   : > { %v1070_v31 = vpop.permute.xlu1 %1069  ;;  %v1007_v32 = vpop.permute.xlu0 %1006 }
  0xe6   : > { %1092 = vst.msk [vmem:[#allocation4 + $0x8] sm:$0xf] %vm1089_vm1, %v1070_v31 }
  0xe7   : > { %1028 = vst.msk [vmem:[#allocation4 + $0xc] sm:$0xf] %vm1024_vm15, %v1007_v32 }
  0xe8   : > { %1093 = vst.msk [vmem:[#allocation4 + $0xc] sm:$0xf] %vm1089_vm1, %v1072_v5 }
  0xe9   : > { %v752_v10 = vpop.permute.xlu2 %751 }
  0xed   : > { %v1137_v33 = vpop.permute.xlu1 %1136  ;;  %v1135_v34 = vpop.permute.xlu0 %1134 }
  0xee   : > { %1158 = vst.msk [vmem:[#allocation4 + $0xc] sm:$0xf] %vm1154_vm3, %v1137_v33 }
  0xef   : > { %1157 = vst.msk [vmem:[#allocation4 + $0x8] sm:$0xf] %vm1154_vm3, %v1135_v34 }
  0xf1   : > { %v879_v35 = vpop.permute.xlu2 %878 }
  0xf5   : > { %v687_v36 = vpop.permute.xlu0 %686  ;;  %v750_v37 = vpop.permute.xlu1 %749 }
  0xf6   : > { %706 = vst.msk [vmem:[#allocation4 + $0x14] sm:$0xf] %vm700_vm13, %v687_v36  ;;  %v2177_v38 = vld [vmem:[#allocation4 + $0x8] sm:$0xff] }
  0xf7   : > { %770 = vst.msk [vmem:[#allocation4 + $0x10] sm:$0xf] %vm765_vm14, %v750_v37  ;;  %2127 = vmatmul.msk.bf16.gmra.mxu0 %vm1211_vm4, %v2177_v38 }
  0xf8   : > { %771 = vst.msk [vmem:[#allocation4 + $0x14] sm:$0xf] %vm765_vm14, %v752_v10 }
  0xf9   : > { %v946_v40 = vpop.permute.xlu2 %945 }
  0xfd   : > { %v814_v42 = vpop.permute.xlu0 %813  ;;  %v816_v43 = vpop.permute.xlu1 %815 }
  0xfe   : > { %834 = vst.msk [vmem:[#allocation4 + $0x10] sm:$0xf] %vm829_vm2, %v814_v42 }
  0xff   : > { %835 = vst.msk [vmem:[#allocation4 + $0x14] sm:$0xf] %vm829_vm2, %v816_v43 }
 0x100   : > { %899 = vst.msk [vmem:[#allocation4 + $0x10] sm:$0xf] %vm894_vm10, %v879_v35 }
 0x101   : > { %v1074_v45 = vpop.permute.xlu2 %1073 }
 0x105   : > { %v881_v47 = vpop.permute.xlu0 %880  ;;  %v944_v48 = vpop.permute.xlu1 %943 }
 0x106   : > { %900 = vst.msk [vmem:[#allocation4 + $0x14] sm:$0xf] %vm894_vm10, %v881_v47 }
 0x107   : > { %964 = vst.msk [vmem:[#allocation4 + $0x10] sm:$0xf] %vm959_vm11, %v944_v48 }
 0x108   : > { %965 = vst.msk [vmem:[#allocation4 + $0x14] sm:$0xf] %vm959_vm11, %v946_v40 }
 0x109   : > { %v1141_v49 = vpop.permute.xlu2 %1140 }
 0x10d   : > { %v1009_v50 = vpop.permute.xlu0 %1008  ;;  %v1011_v51 = vpop.permute.xlu1 %1010 }
 0x10e   : > { %1029 = vst.msk [vmem:[#allocation4 + $0x10] sm:$0xf] %vm1024_vm15, %v1009_v50 }
 0x10f   : > { %1030 = vst.msk [vmem:[#allocation4 + $0x14] sm:$0xf] %vm1024_vm15, %v1011_v51 }
 0x110   : > { %1094 = vst.msk [vmem:[#allocation4 + $0x10] sm:$0xf] %vm1089_vm1, %v1074_v45 }
 0x111   : > { %v754_v52 = vpop.permute.xlu2 %753 }
 0x115   : > { %v1076_v53 = vpop.permute.xlu0 %1075  ;;  %v1139_v54 = vpop.permute.xlu1 %1138 }
 0x116   : > { %1095 = vst.msk [vmem:[#allocation4 + $0x14] sm:$0xf] %vm1089_vm1, %v1076_v53 }
 0x117   : > { %1159 = vst.msk [vmem:[#allocation4 + $0x10] sm:$0xf] %vm1154_vm3, %v1139_v54 }
 0x118   : > { %1160 = vst.msk [vmem:[#allocation4 + $0x14] sm:$0xf] %vm1154_vm3, %v1141_v49 }
 0x119   : > { %v820_v57 = vpop.permute.xlu2 %819 }
 0x11d   : > { %v689_v55 = vpop.permute.xlu0 %688  ;;  %v691_v56 = vpop.permute.xlu1 %690 }
 0x11e   : > { %707 = vst.msk [vmem:[#allocation4 + $0x18] sm:$0xf] %vm700_vm13, %v689_v55 }
 0x11f   : > { %v2178_v58 = vld [vmem:[#allocation4 + $0x10] sm:$0xff]  ;;  %708 = vst.msk [vmem:[#allocation4 + $0x1c] sm:$0xf] %vm700_vm13, %v691_v56  ;;  %vm358_vm13 = vcmask 57344  }
 0x120   : > { %772 = vst.msk [vmem:[#allocation4 + $0x18] sm:$0xf] %vm765_vm14, %v754_v52  ;;  %2128 = vmatmul.msk.bf16.gmra.mxu0 %vm1211_vm4, %v2178_v58 }
 0x121   : > { %v948_v61 = vpop.permute.xlu2 %947  ;;  %369 = vst.msk [vmem:[#allocation3 + $0x9] sm:$0x1] %vm358_vm13, %v2317_v0 }
 0x122   : > { %359 = vst.msk [vmem:[#allocation3] sm:$0x1] %vm358_vm13, %v2317_v0 }
 0x123   : > { %360 = vst.msk [vmem:[#allocation3 + $0x10] sm:$0x1] %vm358_vm13, %v2317_v0 }
 0x124   : > { %361 = vst.msk [vmem:[#allocation3 + $0x20] sm:$0x1] %vm358_vm13, %v2317_v0 }
 0x125   : > { %v756_v59 = vpop.permute.xlu0 %755  ;;  %v818_v60 = vpop.permute.xlu1 %817  ;;  %362 = vst.msk [vmem:[#allocation3 + $0x30] sm:$0x1] %vm358_vm13, %v2317_v0 }
 0x126   : > { %773 = vst.msk [vmem:[#allocation4 + $0x1c] sm:$0xf] %vm765_vm14, %v756_v59 }
 0x127   : > { %836 = vst.msk [vmem:[#allocation4 + $0x18] sm:$0xf] %vm829_vm2, %v818_v60 }
 0x128   : > { %837 = vst.msk [vmem:[#allocation4 + $0x1c] sm:$0xf] %vm829_vm2, %v820_v57  ;;  %v1396_v3 = vld [vmem:[#allocation3 + $0x2] sm:$0xff] }
 0x129   : > { %v1015_v4 = vpop.permute.xlu2 %1014  ;;  %v1404_v6 = vpack.c.bf16 %v1396_v3, %v1396_v3  ;;  %363 = vst.msk [vmem:[#allocation3 + $0x40] sm:$0x1] %vm358_vm13, %v2317_v0  ;;  %v1314_v60 = vld [vmem:[#allocation3] sm:$0xff] }
 0x12a   : > { %364 = vst.msk [vmem:[#allocation3 + $0x50] sm:$0x1] %vm358_vm13, %v2317_v0  ;;  %v1322_v62 = vpack.c.bf16 %v1314_v60, %v1314_v60 }
 0x12b   : > { %1420 = vrot.lane.b32.xlu1 %v1404_v6, %s2321_s13  ;;  %365 = vst.msk [vmem:[#allocation3 + $0x60] sm:$0x1] %vm358_vm13, %v2317_v0 }
 0x12c   : > { %366 = vst.msk [vmem:[#allocation3 + $0x70] sm:$0x1] %vm358_vm13, %v2317_v0 }
 0x12d   : > { %v883_v1 = vpop.permute.xlu0 %882  ;;  %v885_v2 = vpop.permute.xlu1 %884  ;;  %367 = vst.msk [vmem:[#allocation3 + $0x80] sm:$0x1] %vm358_vm13, %v2317_v0 }
 0x12e   : > { %901 = vst.msk [vmem:[#allocation4 + $0x18] sm:$0xf] %vm894_vm10, %v883_v1 }
 0x12f   : > { %902 = vst.msk [vmem:[#allocation4 + $0x1c] sm:$0xf] %vm894_vm10, %v885_v2  ;;  %vm1387_vm10 = vcmask 126016  }
 0x130   : > { %966 = vst.msk [vmem:[#allocation4 + $0x18] sm:$0xf] %vm959_vm11, %v948_v61 }
 0x131   : > { %368 = vst.msk [vmem:[#allocation3 + $0x90] sm:$0x1] %vm358_vm13, %v2317_v0  ;;  %v1143_v12 = vpop.permute.xlu2 %1142 }
 0x132   : > { %370 = vst.msk [vmem:[#allocation3 + $0x19] sm:$0x1] %vm358_vm13, %v2317_v0 }
 0x133   : > { %371 = vst.msk [vmem:[#allocation3 + $0x29] sm:$0x1] %vm358_vm13, %v2317_v0 }
 0x134   : > { %372 = vst.msk [vmem:[#allocation3 + $0x39] sm:$0x1] %vm358_vm13, %v2317_v0 }
 0x135   : > { %v950_v8 = vpop.permute.xlu0 %949  ;;  %v1013_v9 = vpop.permute.xlu1 %1012  ;;  %373 = vst.msk [vmem:[#allocation3 + $0x49] sm:$0x1] %vm358_vm13, %v2317_v0 }
 0x136   : > { %967 = vst.msk [vmem:[#allocation4 + $0x1c] sm:$0xf] %vm959_vm11, %v950_v8 }
 0x137   : > { %1031 = vst.msk [vmem:[#allocation4 + $0x18] sm:$0xf] %vm1024_vm15, %v1013_v9 }
 0x138   : > { %1032 = vst.msk [vmem:[#allocation4 + $0x1c] sm:$0xf] %vm1024_vm15, %v1015_v4  ;;  %v1632_v15 = vld [vmem:[#allocation3 + $0x90] sm:$0xff]  ;;  %vm1444_vm15 = vcmask 191616  }
 0x139   : > { %374 = vst.msk [vmem:[#allocation3 + $0x59] sm:$0x1] %vm358_vm13, %v2317_v0  ;;  %v1640_v16 = vpack.c.bf16 %v1632_v15, %v1632_v15 }
 0x13a   : > { %375 = vst.msk [vmem:[#allocation3 + $0x69] sm:$0x1] %vm358_vm13, %v2317_v0 }
 0x13b   : > { %376 = vst.msk [vmem:[#allocation3 + $0x79] sm:$0x1] %vm358_vm13, %v2317_v0  ;;  %1663 = vrot.lane.b32.xlu2 %v1640_v16, %s2327_s12 }
 0x13c   : > { %377 = vst.msk [vmem:[#allocation3 + $0x89] sm:$0x1] %vm358_vm13, %v2317_v0 }
 0x13d   : > { %v1078_v13 = vpop.permute.xlu0 %1077  ;;  %v1080_v14 = vpop.permute.xlu1 %1079  ;;  %378 = vst.msk [vmem:[#allocation3 + $0x99] sm:$0x1] %vm358_vm13, %v2317_v0  ;;  %vm1615_vm13 = vcmask 388416  }
 0x13e   : > { %1096 = vst.msk [vmem:[#allocation4 + $0x18] sm:$0xf] %vm1089_vm1, %v1078_v13 }
 0x13f   : > { %1097 = vst.msk [vmem:[#allocation4 + $0x1c] sm:$0xf] %vm1089_vm1, %v1080_v14 }
 0x140   : > { %1161 = vst.msk [vmem:[#allocation4 + $0x18] sm:$0xf] %vm1154_vm3, %v1143_v12 }
 0x141   : > { %1331 = vst.msk [vmem:[#allocation5] sm:$0xf] %vm1330_vm6, %v1322_v62 }
 0x145   : > { %v1145_v17 = vpop.permute.xlu0 %1144 }
 0x146   : > { %1162 = vst.msk [vmem:[#allocation4 + $0x1c] sm:$0xf] %vm1154_vm3, %v1145_v17  ;;  %vm1501_vm3 = vcmask 257216  }
 0x14c   : > { %v1237_v20 = vpop.f32.mrf.mxu0 }
 0x14d   : > { %v2179_v21 = vld [vmem:[#allocation4 + $0x18] sm:$0xff]  ;;  %v1261_v22 = vmul.f32 %v2810_v18, %v1237_v20  ;;  %v1364_v3 = vpop.permute.xlu0 %1363 }
 0x14e   : > { %2129 = vmatmul.msk.bf16.gmra.mxu0 %vm1211_vm4, %v2179_v21  ;;  %1388 = vst.msk [vmem:[#allocation5] sm:$0xf] %vm1387_vm10, %v1364_v3  ;;  %vm1558_vm4 = vcmask 322816  }
 0x14f   : > { %v1273_v23 = vadd.f32 %v2815_v19, %v1261_v22 }
 0x151   : > { %vm1281_vm14 = vcmp.ge.f32.partialorder %v1273_v23, 0.0  ;;  %v1289_v0 = vmul.f32 0.01, %v1273_v23 }
 0x153   : > { %v1297_v24 = vsel %vm1281_vm14, %v1273_v23, %v1289_v0 }
 0x154   : > { %1306 = vst.msk [vmem:[#allocation3 + $0x11] sm:$0xff] %vm351_vm12, %v1297_v24  ;;  %v1239_v25 = vpop.f32.mrf.mxu0 }
 0x155   : > { %v1262_v26 = vmul.f32 %v2810_v18, %v1239_v25 }
 0x157   : > { %v1274_v27 = vadd.f32 %v2815_v19, %v1262_v26 }
 0x159   : > { %vm1282_vm2 = vcmp.ge.f32.partialorder %v1274_v27, 0.0  ;;  %v1290_v5 = vmul.f32 0.01, %v1274_v27 }
 0x15b   : > { %v1298_v28 = vsel %vm1282_vm2, %v1274_v27, %v1290_v5  ;;  %v1510_v29 = vld [vmem:[#allocation3 + $0x11] sm:$0xff]  ;;  %vm1673_vm2 = vcmask 454016  }
 0x15c   : > { %v1397_v30 = vld [vmem:[#allocation3 + $0x12] sm:$0xff]  ;;  %1307 = vst.msk [vmem:[#allocation3 + $0x21] sm:$0xff] %vm351_vm12, %v1298_v28  ;;  %v1518_v32 = vpack.c.bf16 %v1510_v29, %v1510_v29 }
 0x15d   : > { %v1453_v31 = vld [vmem:[#allocation3 + $0x10] sm:$0xff]  ;;  %v1405_v10 = vpack.c.bf16 %v1397_v30, %v1397_v30  ;;  %v2888_v30 = vpop.permute.xlu0 %1720 }
 0x15e   : > { %v1461_v33 = vpack.c.bf16 %v1453_v31, %v1453_v31  ;;  %1534 = vrot.lane.b32.xlu0 %v1518_v32, %s2325_s22  ;;  %1365 = vrot.lane.b32.xlu1 %v1518_v32, %s2319_s18 }
 0x15f   : > { %1422 = vrot.lane.b32.xlu2 %v1405_v10, %s2321_s13 }
 0x160   : > { %1332 = vst.msk [vmem:[#allocation5 + $0x4] sm:$0xf] %vm1330_vm6, %v1461_v33 }
 0x163   : > { %v1398_v34 = vld [vmem:[#allocation3 + $0x22] sm:$0xff] }
 0x164   : > { %v1454_v35 = vld [vmem:[#allocation3 + $0x20] sm:$0xff]  ;;  %v1406_v36 = vpack.c.bf16 %v1398_v34, %v1398_v34 }
 0x165   : > { %v1462_v37 = vpack.c.bf16 %v1454_v35, %v1454_v35  ;;  %v1341_v38 = vld [vmem:[#allocation3 + $0x21] sm:$0xff] }
 0x166   : > { %1424 = vrot.lane.b32.xlu0 %v1406_v36, %s2321_s13  ;;  %1591 = vrot.lane.b32.xlu1 %v1405_v10, %s2328_s26  ;;  %v1349_v39 = vpack.c.bf16 %v1341_v38, %v1341_v38 }
 0x167   : > { %1477 = vrot.lane.b32.xlu2 %v1461_v33, %s2322_s19  ;;  %1333 = vst.msk [vmem:[#allocation5 + $0x8] sm:$0xf] %vm1330_vm6, %v1462_v37 }
 0x16e   : > { %1479 = vrot.lane.b32.xlu0 %v1462_v37, %s2322_s19  ;;  %1367 = vrot.lane.b32.xlu1 %v1349_v39, %s2319_s18 }
 0x16f   : > { %1593 = vrot.lane.b32.xlu2 %v1406_v36, %s2328_s26 }
 0x174   : > { %v1242_v40 = vpop.f32.mrf.mxu0 }
 0x175   : > { %v1263_v41 = vmul.f32 %v2810_v18, %v1242_v40 }
 0x176   : > { %1706 = vrot.lane.b32.xlu0 %v1349_v39, %s2326_s17  ;;  %1536 = vrot.lane.b32.xlu1 %v1349_v39, %s2325_s22 }
 0x177   : > { %1649 = vrot.lane.b32.xlu2 %v1462_v37, %s2327_s12  ;;  %v1275_v42 = vadd.f32 %v2815_v19, %v1263_v41 }
 0x179   : > { %vm1283_vm8 = vcmp.ge.f32.partialorder %v1275_v42, 0.0  ;;  %v1291_v43 = vmul.f32 0.01, %v1275_v42 }
 0x17b   : > { %v1299_v44 = vsel %vm1283_vm8, %v1275_v42, %v1291_v43  ;;  %vm1730_vm8 = vcmask 519616  }
 0x17c   : > { %1308 = vst.msk [vmem:[#allocation3 + $0x31] sm:$0xff] %vm351_vm12, %v1299_v44  ;;  %v1244_v45 = vpop.f32.mrf.mxu0 }
 0x17d   : > { %v1264_v46 = vmul.f32 %v2810_v18, %v1244_v45 }
 0x17e   : > { %1763 = vrot.lane.b32.xlu1 %v1406_v36, %s2329_s10 }
 0x17f   : > { %v1276_v47 = vadd.f32 %v2815_v19, %v1264_v46 }
 0x181   : > { %vm1284_vm9 = vcmp.ge.f32.partialorder %v1276_v47, 0.0  ;;  %v1292_v48 = vmul.f32 0.01, %v1276_v47 }
 0x183   : > { %v1300_v49 = vsel %vm1284_vm9, %v1276_v47, %v1292_v48  ;;  %v1569_v50 = vld [vmem:[#allocation3 + $0x32] sm:$0xff]  ;;  %vm1930_vm9 = vcmask 1043456  }
 0x184   : > { %v1342_v51 = vld [vmem:[#allocation3 + $0x31] sm:$0xff]  ;;  %1309 = vst.msk [vmem:[#allocation3 + $0x41] sm:$0xff] %vm351_vm12, %v1300_v49  ;;  %v2845_v53 = vpack.c.bf16 %v1569_v50, %v1569_v50 }
 0x185   : > { %v1626_v52 = vld [vmem:[#allocation3 + $0x30] sm:$0xff]  ;;  %v1350_v54 = vpack.c.bf16 %v1342_v51, %v1342_v51 }
 0x186   : > { %v1634_v55 = vpack.c.bf16 %v1626_v52, %v1626_v52  ;;  %1595 = vrot.lane.b32.xlu0 %v2845_v53, %s2328_s26  ;;  %1426 = vrot.lane.b32.xlu1 %v2845_v53, %s2321_s13 }
 0x187   : > { %1369 = vrot.lane.b32.xlu2 %v1350_v54, %s2319_s18 }
 0x188   : > { %1334 = vst.msk [vmem:[#allocation5 + $0xc] sm:$0xf] %vm1330_vm6, %v1634_v55 }
 0x18b   : > { %v1456_v56 = vld [vmem:[#allocation3 + $0x40] sm:$0xff] }
 0x18c   : > { %v1464_v57 = vpack.c.bf16 %v1456_v56, %v1456_v56  ;;  %v1513_v58 = vld [vmem:[#allocation3 + $0x41] sm:$0xff] }
 0x18d   : > { %v1521_v59 = vpack.c.bf16 %v1513_v58, %v1513_v58  ;;  %v1570_v61 = vld [vmem:[#allocation3 + $0x42] sm:$0xff] }
 0x18e   : > { %1651 = vrot.lane.b32.xlu0 %v1634_v55, %s2327_s12  ;;  %1335 = vst.msk [vmem:[#allocation5 + $0x10] sm:$0xf] %vm1330_vm6, %v1464_v57  ;;  %1538 = vrot.lane.b32.xlu1 %v1350_v54, %s2325_s22  ;;  %v1578_v63 = vpack.c.bf16 %v1570_v61, %v1570_v61 }
 0x18f   : > { %1481 = vrot.lane.b32.xlu2 %v1634_v55, %s2322_s19 }
 0x195   : > { %v2874_v21 = vpop.permute.xlu2 %1663 }
 0x196   : > { %1483 = vrot.lane.b32.xlu0 %v1464_v57, %s2322_s19  ;;  %1708 = vrot.lane.b32.xlu1 %v1350_v54, %s2326_s17 }
 0x197   : > { %1540 = vrot.lane.b32.xlu2 %v1521_v59, %s2325_s22 }
 0x19d   : > { %v1247_v1 = vpop.f32.mrf.mxu0  ;;  %v1421_v9 = vpop.permute.xlu1 %1420 }
 0x19e   : > { %v1265_v2 = vmul.f32 %v2810_v18, %v1247_v1  ;;  %1767 = vrot.lane.b32.xlu0 %v1578_v63, %s2329_s10  ;;  %1597 = vrot.lane.b32.xlu1 %v1578_v63, %s2328_s26  ;;  %1445 = vst.msk [vmem:[#allocation5] sm:$0xf] %vm1444_vm15, %v1421_v9 }
 0x19f   : > { %1653 = vrot.lane.b32.xlu2 %v1464_v57, %s2327_s12 }
 0x1a0   : > { %v1277_v4 = vadd.f32 %v2815_v19, %v1265_v2 }
 0x1a2   : > { %vm1285_vm11 = vcmp.ge.f32.partialorder %v1277_v4, 0.0  ;;  %v1293_v6 = vmul.f32 0.01, %v1277_v4 }
 0x1a4   : > { %v1301_v7 = vsel %vm1285_vm11, %v1277_v4, %v1293_v6  ;;  %v1812_v6 = vld [vmem:[%s3070_s2 + $0x20] sm:$0xf] }
 0x1a5   : > { %1310 = vst.msk [vmem:[#allocation3 + $0x51] sm:$0xff] %vm351_vm12, %v1301_v7  ;;  %v1249_v8 = vpop.f32.mrf.mxu0  ;;  %v1907_v7 = vunpack.c.l.b16 %v1812_v6 }
 0x1a6   : > { %v1266_v11 = vmul.f32 %v2810_v18, %v1249_v8  ;;  %1710 = vrot.lane.b32.xlu1 %v1521_v59, %s2326_s17  ;;  %v1746_v8 = vld [vmem:[#allocation3 + $0x92] sm:$0xff] }
 0x1a7   : > { %1371 = vrot.lane.b32.xlu2 %v1521_v59, %s2319_s18  ;;  %v1912_v9 = vpack.c.b16 %v1907_v7, %v1907_v7 }
 0x1a8   : > { %v1278_v12 = vadd.f32 %v2815_v19, %v1266_v11 }
 0x1aa   : > { %vm1286_vm1 = vcmp.ge.f32.partialorder %v1278_v12, 0.0  ;;  %v1294_v13 = vmul.f32 0.01, %v1278_v12 }
 0x1ac   : > { %v1302_v14 = vsel %vm1286_vm1, %v1278_v12, %v1294_v13  ;;  %v1685_v15 = vld [vmem:[#allocation3 + $0x51] sm:$0xff]  ;;  %v1932_v13 = vsel %vm1930_vm9, %v1912_v9, 0 }
 0x1ad   : > { %v1628_v16 = vld [vmem:[#allocation3 + $0x50] sm:$0xff]  ;;  %1311 = vst.msk [vmem:[#allocation3 + $0x61] sm:$0xff] %vm351_vm12, %v1302_v14  ;;  %v1693_v17 = vpack.c.bf16 %v1685_v15, %v1685_v15  ;;  %v1754_v15 = vpack.c.bf16 %v1746_v8, %v1746_v8  ;;  %2191 = vmatpush.bf16.msra.mxu3 %v1932_v13  ;;  %1937 = vmatpush.bf16.msra.mxu2 %v1932_v13 }
 0x1ae   : > { %v1636_v20 = vpack.c.bf16 %v1628_v16, %v1628_v16  ;;  %1428 = vrot.lane.b32.xlu1 %v1578_v63, %s2321_s13  ;;  %v1742_v22 = vld [vmem:[#allocation3 + $0x52] sm:$0xff]  ;;  %v1825_v16 = vld [vmem:[%s3075_s7] sm:$0x3] }
 0x1af   : > { %1712 = vrot.lane.b32.xlu2 %v1693_v17, %s2326_s17  ;;  %v1750_v0 = vpack.c.bf16 %v1742_v22, %v1742_v22 }
 0x1b0   : > { %1336 = vst.msk [vmem:[#allocation5 + $0x14] sm:$0xf] %vm1330_vm6, %v1636_v20  ;;  %1655 = vrot.lane.b32.xlu0 %v1636_v20, %s2327_s12 }
 0x1b4   : > { %v1458_v23 = vld [vmem:[#allocation3 + $0x60] sm:$0xff] }
 0x1b5   : > { %v1466_v24 = vpack.c.bf16 %v1458_v23, %v1458_v23  ;;  %v1572_v27 = vld [vmem:[#allocation3 + $0x62] sm:$0xff] }
 0x1b6   : > { %1769 = vrot.lane.b32.xlu1 %v1750_v0, %s2329_s10  ;;  %v1515_v5 = vld [vmem:[#allocation3 + $0x61] sm:$0xff]  ;;  %v1580_v28 = vpack.c.bf16 %v1572_v27, %v1572_v27  ;;  %v2187_v27 = vld [vmem:[%s3070_s2 + $0x8] sm:$0xff] }
 0x1b7   : > { %1430 = vrot.lane.b32.xlu2 %v1750_v0, %s2321_s13  ;;  %1337 = vst.msk [vmem:[#allocation5 + $0x18] sm:$0xf] %vm1330_vm6, %v1466_v24  ;;  %v1523_v29 = vpack.c.bf16 %v1515_v5, %v1515_v5  ;;  %v2186_v5 = vld [vmem:[%s3070_s2] sm:$0xff] }
 0x1b8   : > { %1373 = vrot.lane.b32.xlu0 %v1693_v17, %s2319_s18 }
 0x1b9   : > { %v1423_v25 = vpop.permute.xlu2 %1422 }
 0x1be   : > { %1599 = vrot.lane.b32.xlu1 %v1750_v0, %s2328_s26 }
 0x1bf   : > { %1542 = vrot.lane.b32.xlu2 %v1693_v17, %s2325_s22  ;;  %v1839_v17 = vsel %vm1224_vm7, %v1825_v16, 0  ;;  %vm1917_vm7 = vcmask 588800  }
 0x1c0   : > { %1485 = vrot.lane.b32.xlu0 %v1636_v20, %s2322_s19  ;;  %1848 = vmatpush.bf16.msra.mxu1 %v1839_v17  ;;  %v2188_v20 = vld [vmem:[%s3070_s2 + $0x10] sm:$0xff] }
 0x1c1   : > { %v1478_v26 = vpop.permute.xlu2 %1477 }
 0x1c2   : > { %1502 = vst.msk [vmem:[#allocation5] sm:$0xf] %vm1501_vm3, %v1478_v26 }
 0x1c6   : > { %1487 = vrot.lane.b32.xlu1 %v1466_v24, %s2322_s19 }
 0x1c7   : > { %1601 = vrot.lane.b32.xlu2 %v1580_v28, %s2328_s26 }
 0x1c8   : > { %1544 = vrot.lane.b32.xlu0 %v1523_v29, %s2325_s22 }
 0x1c9   : > { %v1594_v10 = vpop.permute.xlu2 %1593 }
 0x1cb   : > { %v1252_v31 = vpop.f32.mrf.mxu0 }
 0x1cc   : > { %v1267_v32 = vmul.f32 %v2810_v18, %v1252_v31 }
 0x1ce   : > { %v1279_v33 = vadd.f32 %v2815_v19, %v1267_v32  ;;  %1771 = vrot.lane.b32.xlu1 %v1580_v28, %s2329_s10 }
 0x1cf   : > { %1714 = vrot.lane.b32.xlu2 %v1523_v29, %s2326_s17 }
 0x1d0   : > { %vm1287_vm5 = vcmp.ge.f32.partialorder %v1279_v33, 0.0  ;;  %v1295_v34 = vmul.f32 0.01, %v1279_v33  ;;  %1657 = vrot.lane.b32.xlu0 %v1466_v24, %s2327_s12  ;;  %v1535_v35 = vpop.permute.xlu0 %1534  ;;  %v1366_v36 = vpop.permute.xlu1 %1365  ;;  %v1813_v24 = vld [vmem:[#allocation2 + $0x19] ss:$2 sm:$0xff] }
 0x1d1   : > { %1559 = vst.msk [vmem:[#allocation5] sm:$0xf] %vm1558_vm4, %v1535_v35  ;;  %v1650_v41 = vpop.permute.xlu2 %1649 }
 0x1d2   : > { %v1303_v37 = vsel %vm1287_vm5, %v1279_v33, %v1295_v34  ;;  %1389 = vst.msk [vmem:[#allocation5 + $0x4] sm:$0xf] %vm1387_vm10, %v1366_v36  ;;  %v1816_v33 = vld [vmem:[#allocation2 + $0xa9] ss:$2 sm:$0xff] }
 0x1d3   : > { %1312 = vst.msk [vmem:[#allocation3 + $0x71] sm:$0xff] %vm351_vm12, %v1303_v37  ;;  %v1254_v38 = vpop.f32.mrf.mxu0 }
 0x1d4   : > { %1446 = vst.msk [vmem:[#allocation5 + $0x4] sm:$0xf] %vm1444_vm15, %v1423_v25  ;;  %v1268_v39 = vmul.f32 %v2810_v18, %v1254_v38  ;;  %v1814_v25 = vld [vmem:[#allocation2 + $0x49] ss:$2 sm:$0xff] }
 0x1d5   : > { %v1821_v26 = vpack.c.bf16 %v1814_v25, %v1813_v24 }
 0x1d6   : > { %v1280_v40 = vadd.f32 %v2815_v19, %v1268_v39 }
 0x1d7   : > { %1375 = vrot.lane.b32.xlu2 %v1523_v29, %s2319_s18  ;;  %2130 = vmatmul.msk.bf16.vlgmr.msra.gmra.mxu1 %vm305_vm0, %v1821_v26 }
 0x1d8   : > { %vm1288_vm14 = vcmp.ge.f32.partialorder %v1280_v40, 0.0  ;;  %v1296_v42 = vmul.f32 0.01, %v1280_v40  ;;  %1432 = vrot.lane.b32.xlu0 %v1580_v28, %s2321_s13  ;;  %v1425_v43 = vpop.permute.xlu0 %1424  ;;  %v1592_v44 = vpop.permute.xlu1 %1591 }
 0x1d9   : > { %1616 = vst.msk [vmem:[#allocation5] sm:$0xf] %vm1615_vm13, %v1592_v44 }
 0x1da   : > { %v1304_v45 = vsel %vm1288_vm14, %v1280_v40, %v1296_v42  ;;  %v1630_v46 = vld [vmem:[#allocation3 + $0x70] sm:$0xff]  ;;  %1674 = vst.msk [vmem:[#allocation5] sm:$0xf] %vm1673_vm2, %v1650_v41 }
 0x1db   : > { %v1744_v47 = vld [vmem:[#allocation3 + $0x72] sm:$0xff]  ;;  %1313 = vst.msk [vmem:[#allocation3 + $0x81] sm:$0xff] %vm351_vm12, %v1304_v45  ;;  %v1638_v18 = vpack.c.bf16 %v1630_v46, %v1630_v46 }
 0x1dc   : > { %v1687_v48 = vld [vmem:[#allocation3 + $0x71] sm:$0xff]  ;;  %v1752_v19 = vpack.c.bf16 %v1744_v47, %v1744_v47 }
 0x1dd   : > { %v1695_v49 = vpack.c.bf16 %v1687_v48, %v1687_v48  ;;  %1659 = vrot.lane.b32.xlu1 %v1638_v18, %s2327_s12  ;;  %1338 = vst.msk [vmem:[#allocation5 + $0x1c] sm:$0xf] %vm1330_vm6, %v1638_v18  ;;  %vm1787_vm6 = vcmask 585216  }
 0x1df   : > { %1773 = vrot.lane.b32.xlu2 %v1752_v19, %s2329_s10 }
 0x1e0   : > { %1716 = vrot.lane.b32.xlu0 %v1695_v49, %s2326_s17  ;;  %v1480_v50 = vpop.permute.xlu0 %1479  ;;  %v1368_v52 = vpop.permute.xlu1 %1367 }
 0x1e1   : > { %v1370_v51 = vpop.permute.xlu2 %1369  ;;  %1503 = vst.msk [vmem:[#allocation5 + $0x4] sm:$0xf] %vm1501_vm3, %v1480_v50  ;;  %v1818_v50 = vld [vmem:[#allocation2 + $0x109] ss:$2 sm:$0xff] }
 0x1e2   : > { %1390 = vst.msk [vmem:[#allocation5 + $0x8] sm:$0xf] %vm1387_vm10, %v1368_v52  ;;  %v1460_v57 = vld [vmem:[#allocation3 + $0x80] sm:$0xff] }
 0x1e3   : > { %1447 = vst.msk [vmem:[#allocation5 + $0x8] sm:$0xf] %vm1444_vm15, %v1425_v43  ;;  %v1468_v58 = vpack.c.bf16 %v1460_v57, %v1460_v57  ;;  %v1574_v60 = vld [vmem:[#allocation3 + $0x82] sm:$0xff] }
 0x1e4   : > { %1391 = vst.msk [vmem:[#allocation5 + $0xc] sm:$0xf] %vm1387_vm10, %v1370_v51  ;;  %v1517_v62 = vld [vmem:[#allocation3 + $0x81] sm:$0xff]  ;;  %v1582_v63 = vpack.c.bf16 %v1574_v60, %v1574_v60  ;;  %v1819_v60 = vld [vmem:[#allocation2 + $0x139] ss:$2 sm:$0xff] }
 0x1e5   : > { %1434 = vrot.lane.b32.xlu1 %v1752_v19, %s2321_s13  ;;  %v1525_v1 = vpack.c.bf16 %v1517_v62, %v1517_v62  ;;  %s296_s13 = sand.u32 1, %s2307_s28  }
 0x1e6   : > { %s1972_s23 = scalar_lea.sflag [#allocation7], %s296_s13 }
 0x1e7   : > { %1546 = vrot.lane.b32.xlu2 %v1695_v49, %s2325_s22 }
 0x1e8   : > { %1377 = vrot.lane.b32.xlu0 %v1695_v49, %s2319_s18  ;;  %v1707_v54 = vpop.permute.xlu0 %1706  ;;  %v1537_v56 = vpop.permute.xlu1 %1536  ;;  %v1817_v49 = vld [vmem:[#allocation2 + $0xd9] ss:$2 sm:$0xff] }
 0x1e9   : > { %v1482_v55 = vpop.permute.xlu2 %1481  ;;  %1731 = vst.msk [vmem:[#allocation5] sm:$0xf] %vm1730_vm8, %v1707_v54  ;;  %v1823_v52 = vpack.c.bf16 %v1818_v50, %v1817_v49 }
 0x1ea   : > { %1560 = vst.msk [vmem:[#allocation5 + $0x4] sm:$0xf] %vm1558_vm4, %v1537_v56 }
 0x1eb   : > { %1617 = vst.msk [vmem:[#allocation5 + $0x4] sm:$0xf] %vm1615_vm13, %v1594_v10  ;;  %v1815_v10 = vld [vmem:[#allocation2 + $0x79] ss:$2 sm:$0xff] }
 0x1ec   : > { %1504 = vst.msk [vmem:[#allocation5 + $0x8] sm:$0xf] %vm1501_vm3, %v1482_v55  ;;  %v1822_v35 = vpack.c.bf16 %v1816_v33, %v1815_v10 }
 0x1ed   : > { %1489 = vrot.lane.b32.xlu1 %v1638_v18, %s2322_s19 }
 0x1ee   : > { %2131 = vmatmul.msk.bf16.gmra.mxu1 %vm305_vm0, %v1822_v35 }
 0x1ef   : > { %1491 = vrot.lane.b32.xlu2 %v1468_v58, %s2322_s19  ;;  %s2099_s19 = sshll.u32 %s296_s13, 6 }
 0x1f0   : > { %1603 = vrot.lane.b32.xlu0 %v1752_v19, %s2328_s26  ;;  %v1764_v61 = vpop.permute.xlu1 %1763 }
 0x1f1   : > { %v1541_v59 = vpop.permute.xlu2 %1540  ;;  %1788 = vst.msk [vmem:[#allocation5] sm:$0xf] %vm1787_vm6, %v1764_v61  ;;  %v1820_v61 = vld [vmem:[#allocation2 + $0x169] ss:$2 sm:$0xff] }
 0x1f5   : > { %1605 = vrot.lane.b32.xlu1 %v1582_v63, %s2328_s26  ;;  %s2269_s26 = scalar_lea.hbm %s2268_s9, 64 }
 0x1f6   : > { %p2270_p11 = scmp.ne.s32.totalorder %s2268_s9, %s2269_s26  ;;  %p2275_p1 = scmp.lt.s32.totalorder %s2273_s24, %s2269_s26 }
 0x1f7   : > { %1718 = vrot.lane.b32.xlu2 %v1525_v1, %s2326_s17 }
 0x1f8   : > { %1548 = vrot.lane.b32.xlu0 %v1525_v1, %s2325_s22  ;;  %v1596_v2 = vpop.permute.xlu0 %1595  ;;  %v1427_v4 = vpop.permute.xlu1 %1426  ;;  %s3015_s22 = scalar_lea.vmem [#allocation6], %s2099_s19  ;;  %p2271_p12 = pnand %p2270_p11, %p2414_p5 }
 0x1f9   : > { %v1654_v3 = vpop.permute.xlu2 %1653  ;;  %1448 = vst.msk [vmem:[#allocation5 + $0xc] sm:$0xf] %vm1444_vm15, %v1427_v4  ;;  %s1984_s21 = sshll.u32 %s3015_s22, 4  ;;  %p2276_p2 = por %p2275_p1, %p2274_p0  ;;  %s1985_s21 = int_to_ptr.vmem [resolvable:$true] %s1984_s21 }
 0x1fa   : > { %p2272_p13 = pneg %p2271_p12 }
 0x1fc   : > { %p2277_p3 = pnand %p2276_p2, %p2272_p13 }
 0x1fd   : > { %1661 = vrot.lane.b32.xlu1 %v1468_v58, %s2327_s12 }
 0x1fe   : > { %2132 = vmatmul.msk.bf16.gmra.mxu1 %vm305_vm0, %v1823_v52 }
 0x1ff   : > { %1765 = vrot.lane.b32.xlu2 %v2845_v53, %s2329_s10  ;;  %v2189_v53 = vld [vmem:[%s3070_s2 + $0x18] sm:$0xff] }
 0x200   : > { %1775 = vrot.lane.b32.xlu0 %v1582_v63, %s2329_s10  ;;  %v1652_v11 = vpop.permute.xlu0 %1651  ;;  %v1539_v14 = vpop.permute.xlu1 %1538  ;;  %2192 = vmatpush.bf16.msra.mxu3 %v2189_v53  ;;  %v1824_v63 = vpack.c.bf16 %v1820_v61, %v1819_v60 }
 0x201   : > { %v1372_v12 = vpop.permute.xlu2 %1371  ;;  %1675 = vst.msk [vmem:[#allocation5 + $0x4] sm:$0xf] %vm1673_vm2, %v1652_v11  ;;  %1938 = vmatpush.bf16.msra.mxu2 %v2189_v53 }
 0x202   : > { %1561 = vst.msk [vmem:[#allocation5 + $0x8] sm:$0xf] %vm1558_vm4, %v1539_v14 }
 0x203   : > { %1618 = vst.msk [vmem:[#allocation5 + $0x8] sm:$0xf] %vm1615_vm13, %v1596_v2 }
 0x204   : > { %1676 = vst.msk [vmem:[#allocation5 + $0x8] sm:$0xf] %vm1673_vm2, %v1654_v3  ;;  %2193 = vmatpush.bf16.msra.mxu3 %v2188_v20 }
 0x205   : > { %1392 = vst.msk [vmem:[#allocation5 + $0x10] sm:$0xf] %vm1387_vm10, %v1372_v12  ;;  %1777 = vrot.lane.b32.xlu1 %v1754_v15, %s2329_s10  ;;  %1939 = vmatpush.bf16.msra.mxu2 %v2188_v20 }
 0x208   : > { %v1484_v22 = vpop.permute.xlu0 %1483  ;;  %v1709_v23 = vpop.permute.xlu1 %1708  ;;  %2194 = vmatpush.bf16.msra.mxu3 %v2187_v27 }
 0x209   : > { %1505 = vst.msk [vmem:[#allocation5 + $0xc] sm:$0xf] %vm1501_vm3, %v1484_v22  ;;  %v1713_v0 = vpop.permute.xlu2 %1712  ;;  %1940 = vmatpush.bf16.msra.mxu2 %v2187_v27 }
 0x20a   : > { %1732 = vst.msk [vmem:[#allocation5 + $0x4] sm:$0xf] %vm1730_vm8, %v1709_v23 }
 0x20b   : > { %1562 = vst.msk [vmem:[#allocation5 + $0xc] sm:$0xf] %vm1558_vm4, %v1541_v59 }
 0x20c   : > { %2195 = vmatpush.bf16.msra.mxu3 %v2186_v5 }
 0x20d   : > { %1941 = vmatpush.bf16.msra.mxu2 %v2186_v5 }
 0x20e   : > { %2133 = vmatmul.msk.bf16.gmra.mxu1 %vm305_vm0, %v1824_v63 }
 0x210   : > { %v1598_v28 = vpop.permute.xlu1 %1597  ;;  %v1768_v34 = vpop.permute.xlu0 %1767 }
 0x211   : > { %v1431_v29 = vpop.permute.xlu2 %1430  ;;  %1619 = vst.msk [vmem:[#allocation5 + $0xc] sm:$0xf] %vm1615_vm13, %v1598_v28 }
 0x218   : > { %v1711_v31 = vpop.permute.xlu1 %1710 }
 0x219   : > { %v1543_v32 = vpop.permute.xlu2 %1542  ;;  %1733 = vst.msk [vmem:[#allocation5 + $0x8] sm:$0xf] %vm1730_vm8, %v1711_v31 }
 0x21a   : > { %1790 = vst.msk [vmem:[#allocation5 + $0x8] sm:$0xf] %vm1787_vm6, %v1768_v34 }
 0x220   : > { %v1429_v36 = vpop.permute.xlu1 %1428 }
 0x221   : > { %v1602_v37 = vpop.permute.xlu2 %1601  ;;  %1449 = vst.msk [vmem:[#allocation5 + $0x10] sm:$0xf] %vm1444_vm15, %v1429_v36 }
 0x222   : > { %v1656_v38 = vpop.permute.xlu0 %1655 }
 0x223   : > { %1677 = vst.msk [vmem:[#allocation5 + $0xc] sm:$0xf] %vm1673_vm2, %v1656_v38 }
 0x224   : > { %1734 = vst.msk [vmem:[#allocation5 + $0xc] sm:$0xf] %vm1730_vm8, %v1713_v0 }
 0x228   : > { %v1770_v39 = vpop.permute.xlu1 %1769 }
 0x229   : > { %v1715_v40 = vpop.permute.xlu2 %1714  ;;  %1791 = vst.msk [vmem:[#allocation5 + $0xc] sm:$0xf] %vm1787_vm6, %v1770_v39 }
 0x22a   : > { %v1374_v41 = vpop.permute.xlu0 %1373 }
 0x22b   : > { %1393 = vst.msk [vmem:[#allocation5 + $0x14] sm:$0xf] %vm1387_vm10, %v1374_v41 }
 0x22c   : > { %1450 = vst.msk [vmem:[#allocation5 + $0x14] sm:$0xf] %vm1444_vm15, %v1431_v29 }
 0x230   : > { %v1600_v42 = vpop.permute.xlu1 %1599  ;;  %v2183_v44 = vld [vmem:[#allocation5 + $0x8] sm:$0xff] }
 0x231   : > { %v1376_v43 = vpop.permute.xlu2 %1375  ;;  %2167 = vmatmul.msk.bf16.vlgmr.msra.gmra.mxu3 %vm1917_vm7, %v2183_v44 }
 0x232   : > { %v1486_v45 = vpop.permute.xlu0 %1485  ;;  %1394 = vst.msk [vmem:[#allocation5 + $0x18] sm:$0xf] %vm1387_vm10, %v1376_v43 }
 0x233   : > { %1506 = vst.msk [vmem:[#allocation5 + $0x10] sm:$0xf] %vm1501_vm3, %v1486_v45 }
 0x234   : > { %1563 = vst.msk [vmem:[#allocation5 + $0x10] sm:$0xf] %vm1558_vm4, %v1543_v32 }
 0x235   : > { %1620 = vst.msk [vmem:[#allocation5 + $0x10] sm:$0xf] %vm1615_vm13, %v1600_v42 }
 0x238   : > { %v1488_v46 = vpop.permute.xlu1 %1487 }
 0x239   : > { %v1774_v47 = vpop.permute.xlu2 %1773  ;;  %1507 = vst.msk [vmem:[#allocation5 + $0x14] sm:$0xf] %vm1501_vm3, %v1488_v46 }
 0x23a   : > { %v1545_v48 = vpop.permute.xlu0 %1544 }
 0x23b   : > { %1564 = vst.msk [vmem:[#allocation5 + $0x14] sm:$0xf] %vm1558_vm4, %v1545_v48 }
 0x23c   : > { %1621 = vst.msk [vmem:[#allocation5 + $0x14] sm:$0xf] %vm1615_vm13, %v1602_v37 }
 0x240   : > { %v1772_v51 = vpop.permute.xlu1 %1771 }
 0x241   : > { %v1547_v18 = vpop.permute.xlu2 %1546 }
 0x242   : > { %v1658_v19 = vpop.permute.xlu0 %1657 }
 0x243   : > { %1678 = vst.msk [vmem:[#allocation5 + $0x10] sm:$0xf] %vm1673_vm2, %v1658_v19 }
 0x244   : > { %1735 = vst.msk [vmem:[#allocation5 + $0x10] sm:$0xf] %vm1730_vm8, %v1715_v40 }
 0x245   : > { %1792 = vst.msk [vmem:[#allocation5 + $0x10] sm:$0xf] %vm1787_vm6, %v1772_v51 }
 0x249   : > { %v1492_v54 = vpop.permute.xlu2 %1491 }
 0x24a   : > { %v1433_v55 = vpop.permute.xlu0 %1432 }
 0x24b   : > { %1451 = vst.msk [vmem:[#allocation5 + $0x18] sm:$0xf] %vm1444_vm15, %v1433_v55 }
 0x24f   : > { %v1660_v56 = vpop.permute.xlu1 %1659 }
 0x250   : > { %1679 = vst.msk [vmem:[#allocation5 + $0x14] sm:$0xf] %vm1673_vm2, %v1660_v56 }
 0x251   : > { %v1719_v57 = vpop.permute.xlu2 %1718 }
 0x252   : > { %v1717_v58 = vpop.permute.xlu0 %1716 }
 0x253   : > { %1736 = vst.msk [vmem:[#allocation5 + $0x14] sm:$0xf] %vm1730_vm8, %v1717_v58 }
 0x254   : > { %1793 = vst.msk [vmem:[#allocation5 + $0x14] sm:$0xf] %vm1787_vm6, %v1774_v47  ;;  %v1850_v14 = vpop.f32.mrf.mxu1 }
 0x257   : > { %v1435_v59 = vpop.permute.xlu1 %1434 }
 0x259   : > { %v1766_v62 = vpop.permute.xlu2 %1765 }
 0x25a   : > { %v1378_v1 = vpop.permute.xlu0 %1377  ;;  %1789 = vst.msk [vmem:[#allocation5 + $0x4] sm:$0xf] %vm1787_vm6, %v1766_v62 }
 0x25b   : > { %1395 = vst.msk [vmem:[#allocation5 + $0x1c] sm:$0xf] %vm1387_vm10, %v1378_v1  ;;  %v2184_v2 = vld [vmem:[#allocation5 + $0x10] sm:$0xff] }
 0x25c   : > { %1452 = vst.msk [vmem:[#allocation5 + $0x1c] sm:$0xf] %vm1444_vm15, %v1435_v59  ;;  %2168 = vmatmul.msk.bf16.gmra.mxu3 %vm1917_vm7, %v2184_v2  ;;  %v1852_v15 = vpop.f32.mrf.mxu1 }
 0x25d   : > { %1509 = vst.msk [vmem:[#allocation5 + $0x1c] sm:$0xf] %vm1501_vm3, %v1492_v54 }
 0x25f   : > { %v1490_v3 = vpop.permute.xlu1 %1489 }
 0x260   : > { %1508 = vst.msk [vmem:[#allocation5 + $0x18] sm:$0xf] %vm1501_vm3, %v1490_v3 }
 0x261   : > { %1565 = vst.msk [vmem:[#allocation5 + $0x18] sm:$0xf] %vm1558_vm4, %v1547_v18  ;;  %v2182_v4 = vld [vmem:[#allocation5] sm:$0xff] }
 0x262   : > { %v1604_v6 = vpop.permute.xlu0 %1603  ;;  %2166 = vmatmul.msk.bf16.vlgmr.msra.gmra.mxu2 %vm1917_vm7, %v2182_v4 }
 0x263   : > { %1622 = vst.msk [vmem:[#allocation5 + $0x18] sm:$0xf] %vm1615_vm13, %v1604_v6 }
 0x267   : > { %v1606_v7 = vpop.permute.xlu1 %1605 }
 0x26a   : > { %v1549_v8 = vpop.permute.xlu0 %1548 }
 0x26b   : > { %1566 = vst.msk [vmem:[#allocation5 + $0x1c] sm:$0xf] %vm1558_vm4, %v1549_v8 }
 0x26c   : > { %1623 = vst.msk [vmem:[#allocation5 + $0x1c] sm:$0xf] %vm1615_vm13, %v1606_v7 }
 0x26d   : > { %1681 = vst.msk [vmem:[#allocation5 + $0x1c] sm:$0xf] %vm1673_vm2, %v2874_v21  ;;  %v1855_v21 = vpop.f32.mrf.mxu1 }
 0x26e   : > { %1738 = vst.msk [vmem:[#allocation5 + $0x1c] sm:$0xf] %vm1730_vm8, %v2888_v30 }
 0x26f   : > { %v1662_v9 = vpop.permute.xlu1 %1661 }
 0x270   : > { %1680 = vst.msk [vmem:[#allocation5 + $0x18] sm:$0xf] %vm1673_vm2, %v1662_v9 }
 0x271   : > { %1737 = vst.msk [vmem:[#allocation5 + $0x18] sm:$0xf] %vm1730_vm8, %v1719_v57 }
 0x272   : > { %v1776_v11 = vpop.permute.xlu0 %1775 }
 0x273   : > { %1794 = vst.msk [vmem:[#allocation5 + $0x18] sm:$0xf] %vm1787_vm6, %v1776_v11 }
 0x275   : > { %v1857_v16 = vpop.f32.mrf.mxu1 }
 0x277   : > { %v1778_v12 = vpop.permute.xlu1 %1777 }
 0x278   : > { %1795 = vst.msk [vmem:[#allocation5 + $0x1c] sm:$0xf] %vm1787_vm6, %v1778_v12 }
 0x27d   : > { %v1860_v22 = vpop.f32.mrf.mxu1 }
 0x27f   : > { %v2185_v13 = vld [vmem:[#allocation5 + $0x18] sm:$0xff] }
 0x280   : > { %2169 = vmatmul.msk.bf16.gmra.mxu3 %vm1917_vm7, %v2185_v13 }
 0x285   : > { %v1862_v25 = vpop.f32.mrf.mxu1 }
 0x28d   : > { %v1865_v31 = vpop.f32.mrf.mxu1 }
 0x295   : > { %v1867_v33 = vpop.f32.mrf.mxu1 }
 0x2b4   : > { %v1948_v30 = vpop.f32.mrf.mxu3 }
 0x2b5   : > { %v1949_v53 = vadd.f32 %v1948_v30, %v1855_v21 }
 0x2b7   : > { %1965 = vst.msk [vmem:[%s3015_s22 + $0x10] sm:$0xff] %vm351_vm12, %v1949_v53 }
 0x2bc   : > { %v1950_v17 = vpop.f32.mrf.mxu3 }
 0x2bd   : > { %v1951_v20 = vadd.f32 %v1950_v17, %v1857_v16 }
 0x2bf   : > { %1966 = vst.msk [vmem:[%s3015_s22 + $0x18] sm:$0xff] %vm351_vm12, %v1951_v20 }
 0x2df   : > { %v1953_v23 = vpop.f32.mrf.mxu3 }
 0x2e0   : > { %v1954_v0 = vadd.f32 %v1953_v23, %v1860_v22 }
 0x2e2   : > { %1967 = vst.msk [vmem:[%s3015_s22 + $0x20] sm:$0xff] %vm351_vm12, %v1954_v0 }
 0x2e5   : > { %v1943_v24 = vpop.f32.mrf.mxu2 }
 0x2e6   : > { %v1944_v26 = vadd.f32 %v1943_v24, %v1850_v14 }
 0x2e7   : > { %v1955_v27 = vpop.f32.mrf.mxu3 }
 0x2e8   : > { %1963 = vst.msk [vmem:[%s3015_s22] sm:$0xff] %vm351_vm12, %v1944_v26  ;;  %v1956_v5 = vadd.f32 %v1955_v27, %v1862_v25 }
 0x2ea   : > { %1968 = vst.msk [vmem:[%s3015_s22 + $0x28] sm:$0xff] %vm351_vm12, %v1956_v5 }
 0x2ed   : > { %v1945_v28 = vpop.f32.mrf.mxu2 }
 0x2ee   : > { %v1946_v29 = vadd.f32 %v1945_v28, %v1852_v15 }
 0x2f0   : > { %1964 = vst.msk [vmem:[%s3015_s22 + $0x8] sm:$0xff] %vm351_vm12, %v1946_v29 }
 0x303   : > { %v1958_v32 = vpop.f32.mrf.mxu3 }
 0x304   : > { %v1959_v10 = vadd.f32 %v1958_v32, %v1865_v31 }
 0x306   : > { %1969 = vst.msk [vmem:[%s3015_s22 + $0x30] sm:$0xff] %vm351_vm12, %v1959_v10 }
 0x30b   : > { %v1960_v34 = vpop.f32.mrf.mxu3 }
 0x30c   : > { %v1961_v35 = vadd.f32 %v1960_v34, %v1867_v33 }
 0x30e   : > { %1970 = vst.msk [vmem:[%s3015_s22 + $0x38] sm:$0xff] %vm351_vm12, %v1961_v35 }
 0x30f   : > { %2280 = shalt.err (!%p2277_p3)
}
 0x310   : > { %s2330_s13 = smov 128  }
 0x311   : > { %2196 = dma.vmem_to_hbm [thread:$0]  (%p2414_p5), %s1985_s21, 1024, %s1987_s25, %s1972_s23, %s2330_s13, %s2330_s13, %s2319_s18  }
 0x312 PF: > { %p2202_p4 = scmp.ge.s32.totalorder %s2315_s30, 2  ;;  %s2001_s22 = sand.u32 1, %s2303_s27  }
 0x313   : > { %s2002_s20 = scalar_lea.sflag [#allocation7], %s2001_s22 }
 0x314   : > { %p2199_p7 = pnand %p2202_p4, %p2418_p6 }
 0x316   : > { %p2200_p8 = pneg %p2199_p7 }
 0x318   : > { %2298 = dma.done.wait (%p2200_p8), %s2002_s20, 1024  }
 0x319   : > { %2300 = vsyncadd (%p2200_p8), %s2002_s20, 4294966272  ;;  %p18_p9 = scmp.ge.s32.totalorder %s2401_s11, 4   ;;  %s3079_s27 = smov %s2307_s28 }
 0x31a   : > { %s3080_s28 = smov %s2311_s29  ;;  %s3081_s29 = smov %s2412_s14 }
 0x31b   : > { %s3082_s30 = smov %s2401_s11  ;;  %20 = sbr.rel (!%p18_p9) target bundleno = 3 (0x3), region = 162 }
 0x320   :  { %2008 = vsyncpa [#allocation7], 1 }
 0x321   :  { %2010 = vsyncpa [#allocation7 + $0x1], 1 }

</bundles_post_ra>
